<compile_context>
chip_gen: v6e
topology: v6e:2x2x1
jax: 0.10.0
libtpu: 0.0.40
codegen_flags: <defaults>
</compile_context>

<pallas_src>
import functools

import numpy as np

import jax
import jax.numpy as jnp
from jax.experimental import pallas as pl
from jax.experimental.pallas import tpu as pltpu


# ----------------------------------------------------------------------------
# Fused Pallas kernel: whole DQN forward on VMEM-resident operands.
# ----------------------------------------------------------------------------
def _dqn_fused_kernel(patches_ref, w1_ref, b1_ref, w2_ref, b2_ref,
                      wfc1_ref, bfc1_ref, wfc2_ref, bfc2_ref, o_ref):
    B = o_ref.shape[0]
    n_pos = w2_ref.shape[0]                       # conv1 output positions (36)
    assert patches_ref.shape[0] == n_pos * B      # trace-time sanity check

    # conv1 + relu: single im2col matmul (rows ordered (ho, wo, b)).
    h1 = jnp.dot(patches_ref[...], w1_ref[...],
                 preferred_element_type=jnp.float32) + b1_ref[...]
    h1 = jnp.maximum(h1, 0.0)                     # (n_pos*B, 16)

    # conv2 + relu (+ flatten), folded into dense per-position matmuls.
    acc2 = jnp.zeros((B, w2_ref.shape[2]), jnp.float32)
    for p in range(n_pos):                        # static, fully unrolled
        acc2 = acc2 + jnp.dot(h1[p * B:(p + 1) * B, :], w2_ref[p],
                              preferred_element_type=jnp.float32)
    h2 = jnp.maximum(acc2 + b2_ref[...], 0.0)     # (B, 128) == flattened conv out

    # fc1 + relu
    h3 = jnp.dot(h2, wfc1_ref[...], preferred_element_type=jnp.float32)
    h3 = jnp.maximum(h3 + bfc1_ref[...], 0.0)     # (B, 256)

    # fc2 (lane-dense, action dim pre-padded to 128)
    q = jnp.dot(h3, wfc2_ref[...], preferred_element_type=jnp.float32)
    o_ref[...] = (q + bfc2_ref[...]).astype(o_ref.dtype)


def _full_block(shape):
    """Whole-array VMEM block for a grid-less pallas_call."""
    return pl.BlockSpec(shape, lambda: (0,) * len(shape))


# ----------------------------------------------------------------------------
# Forward wrapper: one transpose + 4 slices of cheap layout plumbing (fused by
# jit) feeding a single pallas_call.
# ----------------------------------------------------------------------------
@functools.partial(jax.jit, static_argnames=("n_actions",))
def dqn_agent_forward(state_t, packed, n_actions):
    """state_t: (B, num_frames, H, W) f32 -> q_values (B, n_actions) f32."""
    B, C, H, W = state_t.shape
    K1, S1 = 8, 4                                  # conv1 geometry (module spec)
    assert K1 == 2 * S1 and H % S1 == 0 and W % S1 == 0
    Hb, Wb = H // S1, W // S1
    Ho1, Wo1 = (H - K1) // S1 + 1, (W - K1) // S1 + 1

    # Space-to-depth (stride-4 blocks): conv1 becomes a 2x2 stride-1 conv.
    x = state_t.reshape(B, C, Hb, S1, Wb, S1)
    x = x.transpose(2, 4, 0, 3, 5, 1).reshape(Hb, Wb, B, S1 * S1 * C)
    # conv1 im2col in block space: 4 contiguous slices -> (Ho1*Wo1*B, 4*S1*S1*C).
    patches = jnp.concatenate(
        [x[di:di + Ho1, dj:dj + Wo1] for di in range(2) for dj in range(2)],
        axis=-1,
    ).reshape(Ho1 * Wo1 * B, 4 * S1 * S1 * C)

    n_pad = packed["wfc2"].shape[1]
    operands = (patches, packed["w1"], packed["b1"], packed["w2"], packed["b2"],
                packed["wfc1"], packed["bfc1"], packed["wfc2"], packed["bfc2"])

    q_pad = pl.pallas_call(
        _dqn_fused_kernel,
        out_shape=jax.ShapeDtypeStruct((B, n_pad), jnp.float32),
        in_specs=[_full_block(op.shape) for op in operands],
        out_specs=_full_block((B, n_pad)),
        compiler_params=pltpu.CompilerParams(vmem_limit_bytes=16 * 1024 * 1024),
    )(*operands)
    return q_pad[:, :n_actions]


# ----------------------------------------------------------------------------
# One-time parameter repack: PyTorch layout -> kernel-ready layout.
# ----------------------------------------------------------------------------
def pack_params(params, state_shape, n_actions):
    C, H, W = state_shape
    K1, S1 = 8, 4
    K2, S2 = 4, 2
    OC1 = params["conv1_w"].shape[0]               # 16
    OC2 = params["conv2_w"].shape[0]               # 32
    Ho1, Wo1 = (H - K1) // S1 + 1, (W - K1) // S1 + 1
    Ho2, Wo2 = (Ho1 - K2) // S2 + 1, (Wo1 - K2) // S2 + 1
    n_pos1 = Ho1 * Wo1
    conv2_cols = Ho2 * Wo2 * OC2                   # flattened conv output size
    fc_hidden = params["fc1_w"].shape[0]           # 256
    n_pad = 128                                    # lane-dense padded action dim
    assert n_actions <= n_pad

    # conv1: (OC1, C, 8, 8) -> (2*2*S1*S1*C, OC1); rows ordered (di, dj, ph, pw, c)
    # to match the space-to-depth patch columns built in the wrapper.
    w1 = params["conv1_w"].reshape(OC1, C, 2, S1, 2, S1)
    w1 = w1.transpose(2, 4, 3, 5, 1, 0).reshape(4 * S1 * S1 * C, OC1)
    b1 = params["conv1_b"].reshape(1, OC1)

    # conv2 folded with flatten: dense per-position blocks (n_pos1, OC1, conv2_cols),
    # output columns ordered (ho2, wo2, oc2).
    w2_np = np.asarray(params["conv2_w"], np.float32)          # (OC2, OC1, 4, 4)
    w2_full = np.zeros((n_pos1, OC1, conv2_cols), np.float32)
    for ho in range(Ho2):
        for wo in range(Wo2):
            q0 = (ho * Wo2 + wo) * OC2
            for i in range(K2):
                for j in range(K2):
                    p = (ho * S2 + i) * Wo1 + (wo * S2 + j)
                    w2_full[p, :, q0:q0 + OC2] = w2_np[:, :, i, j].T
    w2 = jnp.asarray(w2_full)
    b2 = jnp.tile(params["conv2_b"], Ho2 * Wo2).reshape(1, conv2_cols)

    # fc1: pre-transposed to (conv2_cols, 256) with input columns permuted from
    # PyTorch's NCHW flatten order (oc2, ho2, wo2) to our (ho2, wo2, oc2).
    wfc1 = params["fc1_w"].reshape(fc_hidden, OC2, Ho2, Wo2)
    wfc1 = wfc1.transpose(2, 3, 1, 0).reshape(conv2_cols, fc_hidden)
    bfc1 = params["fc1_b"].reshape(1, fc_hidden)

    # fc2: pre-transposed and zero-padded to a lane-dense 128-wide output.
    wfc2 = jnp.zeros((fc_hidden, n_pad), jnp.float32).at[:, :n_actions].set(
        params["fc2_w"].T)
    bfc2 = jnp.zeros((1, n_pad), jnp.float32).at[0, :n_actions].set(
        params["fc2_b"])

    return {"w1": w1, "b1": b1, "w2": w2, "b2": b2,
            "wfc1": wfc1, "bfc1": bfc1, "wfc2": wfc2, "bfc2": bfc2}


# ----------------------------------------------------------------------------
# PyTorch-layout parameter init (matches the nn.Module shapes exactly).
# ----------------------------------------------------------------------------
def init_params(key, state_shape, n_actions):
    num_frames, H, W = state_shape
    Ho1, Wo1 = (H - 8) // 4 + 1, (W - 8) // 4 + 1
    Ho2, Wo2 = (Ho1 - 4) // 2 + 1, (Wo1 - 4) // 2 + 1
    conv_out_size = 32 * Ho2 * Wo2

    ks = jax.random.split(key, 8)
    scale = 0.05
    return {
        "conv1_w": scale * jax.random.normal(ks[0], (16, num_frames, 8, 8), jnp.float32),
        "conv1_b": scale * jax.random.normal(ks[1], (16,), jnp.float32),
        "conv2_w": scale * jax.random.normal(ks[2], (32, 16, 4, 4), jnp.float32),
        "conv2_b": scale * jax.random.normal(ks[3], (32,), jnp.float32),
        "fc1_w":   scale * jax.random.normal(ks[4], (256, conv_out_size), jnp.float32),
        "fc1_b":   scale * jax.random.normal(ks[5], (256,), jnp.float32),
        "fc2_w":   scale * jax.random.normal(ks[6], (n_actions, 256), jnp.float32),
        "fc2_b":   scale * jax.random.normal(ks[7], (n_actions,), jnp.float32),
    }


def _reference_forward(state_t, params):
    """Plain-JAX/XLA reference matching the PyTorch module semantics."""
    dn = ("NCHW", "OIHW", "NCHW")
    x = jax.lax.conv_general_dilated(state_t, params["conv1_w"], (4, 4), "VALID",
                                     dimension_numbers=dn)
    x = jax.nn.relu(x + params["conv1_b"][None, :, None, None])
    x = jax.lax.conv_general_dilated(x, params["conv2_w"], (2, 2), "VALID",
                                     dimension_numbers=dn)
    x = jax.nn.relu(x + params["conv2_b"][None, :, None, None])
    x = x.reshape(x.shape[0], -1)                  # NCHW flatten, like nn.Flatten
    x = jax.nn.relu(x @ params["fc1_w"].T + params["fc1_b"])
    return x @ params["fc2_w"].T + params["fc2_b"]


if __name__ == "__main__":
    # Small shapes consistent with the module: 4 stacked frames, 28x28 spatial
    # (conv1 k=8 s=4 -> 6x6, conv2 k=4 s=2 -> 2x2, conv_out=128), 4 actions.
    batch = 2
    state_shape = (4, 28, 28)
    n_actions = 4

    key = jax.random.PRNGKey(0)
    k_params, k_state = jax.random.split(key)
    params = init_params(k_params, state_shape, n_actions)
    packed = pack_params(params, state_shape, n_actions)   # one-time repack
    state_t = jax.random.uniform(k_state, (batch,) + state_shape, jnp.float32)

    q_values = jax.block_until_ready(dqn_agent_forward(state_t, packed, n_actions))
    assert q_values.shape == (batch, n_actions), q_values.shape
    assert q_values.dtype == jnp.float32

    # Correctness check against a plain-JAX reference of the PyTorch module.
    q_ref = jax.block_until_ready(_reference_forward(state_t, params))
    np.testing.assert_allclose(np.asarray(q_values), np.asarray(q_ref),
                               rtol=5e-3, atol=5e-3)

    print("KERNEL_OK")
</pallas_src>

<mosaic_0001>
module attributes {stable_mosaic.version = 11 : i64} {
  func.func @_dqn_fused_kernel(%arg0: memref<72x256xf32, #tpu.memory_space<vmem>>, %arg1: memref<256x16xf32, #tpu.memory_space<vmem>>, %arg2: memref<1x16xf32, #tpu.memory_space<vmem>>, %arg3: memref<36x16x128xf32, #tpu.memory_space<vmem>>, %arg4: memref<1x128xf32, #tpu.memory_space<vmem>>, %arg5: memref<128x256xf32, #tpu.memory_space<vmem>>, %arg6: memref<1x256xf32, #tpu.memory_space<vmem>>, %arg7: memref<256x128xf32, #tpu.memory_space<vmem>>, %arg8: memref<1x128xf32, #tpu.memory_space<vmem>>, %arg9: memref<2x128xf32, #tpu.memory_space<vmem>>) attributes {dimension_semantics = [], scalar_prefetch = 0 : i64, scratch_operands = 0 : i64, tpu.core_type = #tpu.core_type<tc>} {
    %c0 = arith.constant 0 : index
    %c0_0 = arith.constant 0 : index
    %0 = vector.load %arg0[%c0, %c0_0] : memref<72x256xf32, #tpu.memory_space<vmem>>, vector<72x256xf32>
    %c0_1 = arith.constant 0 : index
    %c0_2 = arith.constant 0 : index
    %1 = vector.load %arg1[%c0_1, %c0_2] : memref<256x16xf32, #tpu.memory_space<vmem>>, vector<256x16xf32>
    %cst = arith.constant dense<0.000000e+00> : vector<72x16xf32>
    %2 = tpu.matmul %0, %1, %cst {dimension_numbers = #tpu.dot_dimension_numbers<[1], [0], [0], [1], [0, 0, 1, 1], [], []>} : vector<72x256xf32>, vector<256x16xf32>, vector<72x16xf32> -> vector<72x16xf32>
    %c0_3 = arith.constant 0 : index
    %c0_4 = arith.constant 0 : index
    %3 = vector.load %arg2[%c0_3, %c0_4] : memref<1x16xf32, #tpu.memory_space<vmem>>, vector<1x16xf32>
    %4 = vector.broadcast %3 : vector<1x16xf32> to vector<72x16xf32>
    %5 = arith.addf %2, %4 : vector<72x16xf32>
    %cst_5 = arith.constant 0.000000e+00 : f32
    %6 = vector.broadcast %cst_5 : f32 to vector<72x16xf32>
    %7 = arith.maximumf %5, %6 : vector<72x16xf32>
    %cst_6 = arith.constant 0.000000e+00 : f32
    %8 = vector.broadcast %cst_6 : f32 to vector<2x128xf32>
    %9 = vector.extract_strided_slice %7 {offsets = [0, 0], sizes = [2, 16], strides = [1, 1]} : vector<72x16xf32> to vector<2x16xf32>
    %c0_7 = arith.constant 0 : index
    %c0_8 = arith.constant 0 : index
    %c0_9 = arith.constant 0 : index
    %10 = vector.load %arg3[%c0_7, %c0_8, %c0_9] : memref<36x16x128xf32, #tpu.memory_space<vmem>>, vector<1x16x128xf32>
    %11 = vector.shape_cast %10 : vector<1x16x128xf32> to vector<16x128xf32>
    %cst_10 = arith.constant dense<0.000000e+00> : vector<2x128xf32>
    %12 = tpu.matmul %9, %11, %cst_10 {dimension_numbers = #tpu.dot_dimension_numbers<[1], [0], [0], [1], [0, 0, 1, 1], [], []>} : vector<2x16xf32>, vector<16x128xf32>, vector<2x128xf32> -> vector<2x128xf32>
    %13 = arith.addf %8, %12 : vector<2x128xf32>
    %14 = vector.extract_strided_slice %7 {offsets = [2, 0], sizes = [2, 16], strides = [1, 1]} : vector<72x16xf32> to vector<2x16xf32>
    %c1 = arith.constant 1 : index
    %c0_11 = arith.constant 0 : index
    %c0_12 = arith.constant 0 : index
    %15 = vector.load %arg3[%c1, %c0_11, %c0_12] : memref<36x16x128xf32, #tpu.memory_space<vmem>>, vector<1x16x128xf32>
    %16 = vector.shape_cast %15 : vector<1x16x128xf32> to vector<16x128xf32>
    %cst_13 = arith.constant dense<0.000000e+00> : vector<2x128xf32>
    %17 = tpu.matmul %14, %16, %cst_13 {dimension_numbers = #tpu.dot_dimension_numbers<[1], [0], [0], [1], [0, 0, 1, 1], [], []>} : vector<2x16xf32>, vector<16x128xf32>, vector<2x128xf32> -> vector<2x128xf32>
    %18 = arith.addf %13, %17 : vector<2x128xf32>
    %19 = vector.extract_strided_slice %7 {offsets = [4, 0], sizes = [2, 16], strides = [1, 1]} : vector<72x16xf32> to vector<2x16xf32>
    %c2 = arith.constant 2 : index
    %c0_14 = arith.constant 0 : index
    %c0_15 = arith.constant 0 : index
    %20 = vector.load %arg3[%c2, %c0_14, %c0_15] : memref<36x16x128xf32, #tpu.memory_space<vmem>>, vector<1x16x128xf32>
    %21 = vector.shape_cast %20 : vector<1x16x128xf32> to vector<16x128xf32>
    %cst_16 = arith.constant dense<0.000000e+00> : vector<2x128xf32>
    %22 = tpu.matmul %19, %21, %cst_16 {dimension_numbers = #tpu.dot_dimension_numbers<[1], [0], [0], [1], [0, 0, 1, 1], [], []>} : vector<2x16xf32>, vector<16x128xf32>, vector<2x128xf32> -> vector<2x128xf32>
    %23 = arith.addf %18, %22 : vector<2x128xf32>
    %24 = vector.extract_strided_slice %7 {offsets = [6, 0], sizes = [2, 16], strides = [1, 1]} : vector<72x16xf32> to vector<2x16xf32>
    %c3 = arith.constant 3 : index
    %c0_17 = arith.constant 0 : index
    %c0_18 = arith.constant 0 : index
    %25 = vector.load %arg3[%c3, %c0_17, %c0_18] : memref<36x16x128xf32, #tpu.memory_space<vmem>>, vector<1x16x128xf32>
    %26 = vector.shape_cast %25 : vector<1x16x128xf32> to vector<16x128xf32>
    %cst_19 = arith.constant dense<0.000000e+00> : vector<2x128xf32>
    %27 = tpu.matmul %24, %26, %cst_19 {dimension_numbers = #tpu.dot_dimension_numbers<[1], [0], [0], [1], [0, 0, 1, 1], [], []>} : vector<2x16xf32>, vector<16x128xf32>, vector<2x128xf32> -> vector<2x128xf32>
    %28 = arith.addf %23, %27 : vector<2x128xf32>
    %29 = vector.extract_strided_slice %7 {offsets = [8, 0], sizes = [2, 16], strides = [1, 1]} : vector<72x16xf32> to vector<2x16xf32>
    %c4 = arith.constant 4 : index
    %c0_20 = arith.constant 0 : index
    %c0_21 = arith.constant 0 : index
    %30 = vector.load %arg3[%c4, %c0_20, %c0_21] : memref<36x16x128xf32, #tpu.memory_space<vmem>>, vector<1x16x128xf32>
    %31 = vector.shape_cast %30 : vector<1x16x128xf32> to vector<16x128xf32>
    %cst_22 = arith.constant dense<0.000000e+00> : vector<2x128xf32>
    %32 = tpu.matmul %29, %31, %cst_22 {dimension_numbers = #tpu.dot_dimension_numbers<[1], [0], [0], [1], [0, 0, 1, 1], [], []>} : vector<2x16xf32>, vector<16x128xf32>, vector<2x128xf32> -> vector<2x128xf32>
    %33 = arith.addf %28, %32 : vector<2x128xf32>
    %34 = vector.extract_strided_slice %7 {offsets = [10, 0], sizes = [2, 16], strides = [1, 1]} : vector<72x16xf32> to vector<2x16xf32>
    %c5 = arith.constant 5 : index
    %c0_23 = arith.constant 0 : index
    %c0_24 = arith.constant 0 : index
    %35 = vector.load %arg3[%c5, %c0_23, %c0_24] : memref<36x16x128xf32, #tpu.memory_space<vmem>>, vector<1x16x128xf32>
    %36 = vector.shape_cast %35 : vector<1x16x128xf32> to vector<16x128xf32>
    %cst_25 = arith.constant dense<0.000000e+00> : vector<2x128xf32>
    %37 = tpu.matmul %34, %36, %cst_25 {dimension_numbers = #tpu.dot_dimension_numbers<[1], [0], [0], [1], [0, 0, 1, 1], [], []>} : vector<2x16xf32>, vector<16x128xf32>, vector<2x128xf32> -> vector<2x128xf32>
    %38 = arith.addf %33, %37 : vector<2x128xf32>
    %39 = vector.extract_strided_slice %7 {offsets = [12, 0], sizes = [2, 16], strides = [1, 1]} : vector<72x16xf32> to vector<2x16xf32>
    %c6 = arith.constant 6 : index
    %c0_26 = arith.constant 0 : index
    %c0_27 = arith.constant 0 : index
    %40 = vector.load %arg3[%c6, %c0_26, %c0_27] : memref<36x16x128xf32, #tpu.memory_space<vmem>>, vector<1x16x128xf32>
    %41 = vector.shape_cast %40 : vector<1x16x128xf32> to vector<16x128xf32>
    %cst_28 = arith.constant dense<0.000000e+00> : vector<2x128xf32>
    %42 = tpu.matmul %39, %41, %cst_28 {dimension_numbers = #tpu.dot_dimension_numbers<[1], [0], [0], [1], [0, 0, 1, 1], [], []>} : vector<2x16xf32>, vector<16x128xf32>, vector<2x128xf32> -> vector<2x128xf32>
    %43 = arith.addf %38, %42 : vector<2x128xf32>
    %44 = vector.extract_strided_slice %7 {offsets = [14, 0], sizes = [2, 16], strides = [1, 1]} : vector<72x16xf32> to vector<2x16xf32>
    %c7 = arith.constant 7 : index
    %c0_29 = arith.constant 0 : index
    %c0_30 = arith.constant 0 : index
    %45 = vector.load %arg3[%c7, %c0_29, %c0_30] : memref<36x16x128xf32, #tpu.memory_space<vmem>>, vector<1x16x128xf32>
    %46 = vector.shape_cast %45 : vector<1x16x128xf32> to vector<16x128xf32>
    %cst_31 = arith.constant dense<0.000000e+00> : vector<2x128xf32>
    %47 = tpu.matmul %44, %46, %cst_31 {dimension_numbers = #tpu.dot_dimension_numbers<[1], [0], [0], [1], [0, 0, 1, 1], [], []>} : vector<2x16xf32>, vector<16x128xf32>, vector<2x128xf32> -> vector<2x128xf32>
    %48 = arith.addf %43, %47 : vector<2x128xf32>
    %49 = vector.extract_strided_slice %7 {offsets = [16, 0], sizes = [2, 16], strides = [1, 1]} : vector<72x16xf32> to vector<2x16xf32>
    %c8 = arith.constant 8 : index
    %c0_32 = arith.constant 0 : index
    %c0_33 = arith.constant 0 : index
    %50 = vector.load %arg3[%c8, %c0_32, %c0_33] : memref<36x16x128xf32, #tpu.memory_space<vmem>>, vector<1x16x128xf32>
    %51 = vector.shape_cast %50 : vector<1x16x128xf32> to vector<16x128xf32>
    %cst_34 = arith.constant dense<0.000000e+00> : vector<2x128xf32>
    %52 = tpu.matmul %49, %51, %cst_34 {dimension_numbers = #tpu.dot_dimension_numbers<[1], [0], [0], [1], [0, 0, 1, 1], [], []>} : vector<2x16xf32>, vector<16x128xf32>, vector<2x128xf32> -> vector<2x128xf32>
    %53 = arith.addf %48, %52 : vector<2x128xf32>
    %54 = vector.extract_strided_slice %7 {offsets = [18, 0], sizes = [2, 16], strides = [1, 1]} : vector<72x16xf32> to vector<2x16xf32>
    %c9 = arith.constant 9 : index
    %c0_35 = arith.constant 0 : index
    %c0_36 = arith.constant 0 : index
    %55 = vector.load %arg3[%c9, %c0_35, %c0_36] : memref<36x16x128xf32, #tpu.memory_space<vmem>>, vector<1x16x128xf32>
    %56 = vector.shape_cast %55 : vector<1x16x128xf32> to vector<16x128xf32>
    %cst_37 = arith.constant dense<0.000000e+00> : vector<2x128xf32>
    %57 = tpu.matmul %54, %56, %cst_37 {dimension_numbers = #tpu.dot_dimension_numbers<[1], [0], [0], [1], [0, 0, 1, 1], [], []>} : vector<2x16xf32>, vector<16x128xf32>, vector<2x128xf32> -> vector<2x128xf32>
    %58 = arith.addf %53, %57 : vector<2x128xf32>
    %59 = vector.extract_strided_slice %7 {offsets = [20, 0], sizes = [2, 16], strides = [1, 1]} : vector<72x16xf32> to vector<2x16xf32>
    %c10 = arith.constant 10 : index
    %c0_38 = arith.constant 0 : index
    %c0_39 = arith.constant 0 : index
    %60 = vector.load %arg3[%c10, %c0_38, %c0_39] : memref<36x16x128xf32, #tpu.memory_space<vmem>>, vector<1x16x128xf32>
    %61 = vector.shape_cast %60 : vector<1x16x128xf32> to vector<16x128xf32>
    %cst_40 = arith.constant dense<0.000000e+00> : vector<2x128xf32>
    %62 = tpu.matmul %59, %61, %cst_40 {dimension_numbers = #tpu.dot_dimension_numbers<[1], [0], [0], [1], [0, 0, 1, 1], [], []>} : vector<2x16xf32>, vector<16x128xf32>, vector<2x128xf32> -> vector<2x128xf32>
    %63 = arith.addf %58, %62 : vector<2x128xf32>
    %64 = vector.extract_strided_slice %7 {offsets = [22, 0], sizes = [2, 16], strides = [1, 1]} : vector<72x16xf32> to vector<2x16xf32>
    %c11 = arith.constant 11 : index
    %c0_41 = arith.constant 0 : index
    %c0_42 = arith.constant 0 : index
    %65 = vector.load %arg3[%c11, %c0_41, %c0_42] : memref<36x16x128xf32, #tpu.memory_space<vmem>>, vector<1x16x128xf32>
    %66 = vector.shape_cast %65 : vector<1x16x128xf32> to vector<16x128xf32>
    %cst_43 = arith.constant dense<0.000000e+00> : vector<2x128xf32>
    %67 = tpu.matmul %64, %66, %cst_43 {dimension_numbers = #tpu.dot_dimension_numbers<[1], [0], [0], [1], [0, 0, 1, 1], [], []>} : vector<2x16xf32>, vector<16x128xf32>, vector<2x128xf32> -> vector<2x128xf32>
    %68 = arith.addf %63, %67 : vector<2x128xf32>
    %69 = vector.extract_strided_slice %7 {offsets = [24, 0], sizes = [2, 16], strides = [1, 1]} : vector<72x16xf32> to vector<2x16xf32>
    %c12 = arith.constant 12 : index
    %c0_44 = arith.constant 0 : index
    %c0_45 = arith.constant 0 : index
    %70 = vector.load %arg3[%c12, %c0_44, %c0_45] : memref<36x16x128xf32, #tpu.memory_space<vmem>>, vector<1x16x128xf32>
    %71 = vector.shape_cast %70 : vector<1x16x128xf32> to vector<16x128xf32>
    %cst_46 = arith.constant dense<0.000000e+00> : vector<2x128xf32>
    %72 = tpu.matmul %69, %71, %cst_46 {dimension_numbers = #tpu.dot_dimension_numbers<[1], [0], [0], [1], [0, 0, 1, 1], [], []>} : vector<2x16xf32>, vector<16x128xf32>, vector<2x128xf32> -> vector<2x128xf32>
    %73 = arith.addf %68, %72 : vector<2x128xf32>
    %74 = vector.extract_strided_slice %7 {offsets = [26, 0], sizes = [2, 16], strides = [1, 1]} : vector<72x16xf32> to vector<2x16xf32>
    %c13 = arith.constant 13 : index
    %c0_47 = arith.constant 0 : index
    %c0_48 = arith.constant 0 : index
    %75 = vector.load %arg3[%c13, %c0_47, %c0_48] : memref<36x16x128xf32, #tpu.memory_space<vmem>>, vector<1x16x128xf32>
    %76 = vector.shape_cast %75 : vector<1x16x128xf32> to vector<16x128xf32>
    %cst_49 = arith.constant dense<0.000000e+00> : vector<2x128xf32>
    %77 = tpu.matmul %74, %76, %cst_49 {dimension_numbers = #tpu.dot_dimension_numbers<[1], [0], [0], [1], [0, 0, 1, 1], [], []>} : vector<2x16xf32>, vector<16x128xf32>, vector<2x128xf32> -> vector<2x128xf32>
    %78 = arith.addf %73, %77 : vector<2x128xf32>
    %79 = vector.extract_strided_slice %7 {offsets = [28, 0], sizes = [2, 16], strides = [1, 1]} : vector<72x16xf32> to vector<2x16xf32>
    %c14 = arith.constant 14 : index
    %c0_50 = arith.constant 0 : index
    %c0_51 = arith.constant 0 : index
    %80 = vector.load %arg3[%c14, %c0_50, %c0_51] : memref<36x16x128xf32, #tpu.memory_space<vmem>>, vector<1x16x128xf32>
    %81 = vector.shape_cast %80 : vector<1x16x128xf32> to vector<16x128xf32>
    %cst_52 = arith.constant dense<0.000000e+00> : vector<2x128xf32>
    %82 = tpu.matmul %79, %81, %cst_52 {dimension_numbers = #tpu.dot_dimension_numbers<[1], [0], [0], [1], [0, 0, 1, 1], [], []>} : vector<2x16xf32>, vector<16x128xf32>, vector<2x128xf32> -> vector<2x128xf32>
    %83 = arith.addf %78, %82 : vector<2x128xf32>
    %84 = vector.extract_strided_slice %7 {offsets = [30, 0], sizes = [2, 16], strides = [1, 1]} : vector<72x16xf32> to vector<2x16xf32>
    %c15 = arith.constant 15 : index
    %c0_53 = arith.constant 0 : index
    %c0_54 = arith.constant 0 : index
    %85 = vector.load %arg3[%c15, %c0_53, %c0_54] : memref<36x16x128xf32, #tpu.memory_space<vmem>>, vector<1x16x128xf32>
    %86 = vector.shape_cast %85 : vector<1x16x128xf32> to vector<16x128xf32>
    %cst_55 = arith.constant dense<0.000000e+00> : vector<2x128xf32>
    %87 = tpu.matmul %84, %86, %cst_55 {dimension_numbers = #tpu.dot_dimension_numbers<[1], [0], [0], [1], [0, 0, 1, 1], [], []>} : vector<2x16xf32>, vector<16x128xf32>, vector<2x128xf32> -> vector<2x128xf32>
    %88 = arith.addf %83, %87 : vector<2x128xf32>
    %89 = vector.extract_strided_slice %7 {offsets = [32, 0], sizes = [2, 16], strides = [1, 1]} : vector<72x16xf32> to vector<2x16xf32>
    %c16 = arith.constant 16 : index
    %c0_56 = arith.constant 0 : index
    %c0_57 = arith.constant 0 : index
    %90 = vector.load %arg3[%c16, %c0_56, %c0_57] : memref<36x16x128xf32, #tpu.memory_space<vmem>>, vector<1x16x128xf32>
    %91 = vector.shape_cast %90 : vector<1x16x128xf32> to vector<16x128xf32>
    %cst_58 = arith.constant dense<0.000000e+00> : vector<2x128xf32>
    %92 = tpu.matmul %89, %91, %cst_58 {dimension_numbers = #tpu.dot_dimension_numbers<[1], [0], [0], [1], [0, 0, 1, 1], [], []>} : vector<2x16xf32>, vector<16x128xf32>, vector<2x128xf32> -> vector<2x128xf32>
    %93 = arith.addf %88, %92 : vector<2x128xf32>
    %94 = vector.extract_strided_slice %7 {offsets = [34, 0], sizes = [2, 16], strides = [1, 1]} : vector<72x16xf32> to vector<2x16xf32>
    %c17 = arith.constant 17 : index
    %c0_59 = arith.constant 0 : index
    %c0_60 = arith.constant 0 : index
    %95 = vector.load %arg3[%c17, %c0_59, %c0_60] : memref<36x16x128xf32, #tpu.memory_space<vmem>>, vector<1x16x128xf32>
    %96 = vector.shape_cast %95 : vector<1x16x128xf32> to vector<16x128xf32>
    %cst_61 = arith.constant dense<0.000000e+00> : vector<2x128xf32>
    %97 = tpu.matmul %94, %96, %cst_61 {dimension_numbers = #tpu.dot_dimension_numbers<[1], [0], [0], [1], [0, 0, 1, 1], [], []>} : vector<2x16xf32>, vector<16x128xf32>, vector<2x128xf32> -> vector<2x128xf32>
    %98 = arith.addf %93, %97 : vector<2x128xf32>
    %99 = vector.extract_strided_slice %7 {offsets = [36, 0], sizes = [2, 16], strides = [1, 1]} : vector<72x16xf32> to vector<2x16xf32>
    %c18 = arith.constant 18 : index
    %c0_62 = arith.constant 0 : index
    %c0_63 = arith.constant 0 : index
    %100 = vector.load %arg3[%c18, %c0_62, %c0_63] : memref<36x16x128xf32, #tpu.memory_space<vmem>>, vector<1x16x128xf32>
    %101 = vector.shape_cast %100 : vector<1x16x128xf32> to vector<16x128xf32>
    %cst_64 = arith.constant dense<0.000000e+00> : vector<2x128xf32>
    %102 = tpu.matmul %99, %101, %cst_64 {dimension_numbers = #tpu.dot_dimension_numbers<[1], [0], [0], [1], [0, 0, 1, 1], [], []>} : vector<2x16xf32>, vector<16x128xf32>, vector<2x128xf32> -> vector<2x128xf32>
    %103 = arith.addf %98, %102 : vector<2x128xf32>
    %104 = vector.extract_strided_slice %7 {offsets = [38, 0], sizes = [2, 16], strides = [1, 1]} : vector<72x16xf32> to vector<2x16xf32>
    %c19 = arith.constant 19 : index
    %c0_65 = arith.constant 0 : index
    %c0_66 = arith.constant 0 : index
    %105 = vector.load %arg3[%c19, %c0_65, %c0_66] : memref<36x16x128xf32, #tpu.memory_space<vmem>>, vector<1x16x128xf32>
    %106 = vector.shape_cast %105 : vector<1x16x128xf32> to vector<16x128xf32>
    %cst_67 = arith.constant dense<0.000000e+00> : vector<2x128xf32>
    %107 = tpu.matmul %104, %106, %cst_67 {dimension_numbers = #tpu.dot_dimension_numbers<[1], [0], [0], [1], [0, 0, 1, 1], [], []>} : vector<2x16xf32>, vector<16x128xf32>, vector<2x128xf32> -> vector<2x128xf32>
    %108 = arith.addf %103, %107 : vector<2x128xf32>
    %109 = vector.extract_strided_slice %7 {offsets = [40, 0], sizes = [2, 16], strides = [1, 1]} : vector<72x16xf32> to vector<2x16xf32>
    %c20 = arith.constant 20 : index
    %c0_68 = arith.constant 0 : index
    %c0_69 = arith.constant 0 : index
    %110 = vector.load %arg3[%c20, %c0_68, %c0_69] : memref<36x16x128xf32, #tpu.memory_space<vmem>>, vector<1x16x128xf32>
    %111 = vector.shape_cast %110 : vector<1x16x128xf32> to vector<16x128xf32>
    %cst_70 = arith.constant dense<0.000000e+00> : vector<2x128xf32>
    %112 = tpu.matmul %109, %111, %cst_70 {dimension_numbers = #tpu.dot_dimension_numbers<[1], [0], [0], [1], [0, 0, 1, 1], [], []>} : vector<2x16xf32>, vector<16x128xf32>, vector<2x128xf32> -> vector<2x128xf32>
    %113 = arith.addf %108, %112 : vector<2x128xf32>
    %114 = vector.extract_strided_slice %7 {offsets = [42, 0], sizes = [2, 16], strides = [1, 1]} : vector<72x16xf32> to vector<2x16xf32>
    %c21 = arith.constant 21 : index
    %c0_71 = arith.constant 0 : index
    %c0_72 = arith.constant 0 : index
    %115 = vector.load %arg3[%c21, %c0_71, %c0_72] : memref<36x16x128xf32, #tpu.memory_space<vmem>>, vector<1x16x128xf32>
    %116 = vector.shape_cast %115 : vector<1x16x128xf32> to vector<16x128xf32>
    %cst_73 = arith.constant dense<0.000000e+00> : vector<2x128xf32>
    %117 = tpu.matmul %114, %116, %cst_73 {dimension_numbers = #tpu.dot_dimension_numbers<[1], [0], [0], [1], [0, 0, 1, 1], [], []>} : vector<2x16xf32>, vector<16x128xf32>, vector<2x128xf32> -> vector<2x128xf32>
    %118 = arith.addf %113, %117 : vector<2x128xf32>
    %119 = vector.extract_strided_slice %7 {offsets = [44, 0], sizes = [2, 16], strides = [1, 1]} : vector<72x16xf32> to vector<2x16xf32>
    %c22 = arith.constant 22 : index
    %c0_74 = arith.constant 0 : index
    %c0_75 = arith.constant 0 : index
    %120 = vector.load %arg3[%c22, %c0_74, %c0_75] : memref<36x16x128xf32, #tpu.memory_space<vmem>>, vector<1x16x128xf32>
    %121 = vector.shape_cast %120 : vector<1x16x128xf32> to vector<16x128xf32>
    %cst_76 = arith.constant dense<0.000000e+00> : vector<2x128xf32>
    %122 = tpu.matmul %119, %121, %cst_76 {dimension_numbers = #tpu.dot_dimension_numbers<[1], [0], [0], [1], [0, 0, 1, 1], [], []>} : vector<2x16xf32>, vector<16x128xf32>, vector<2x128xf32> -> vector<2x128xf32>
    %123 = arith.addf %118, %122 : vector<2x128xf32>
    %124 = vector.extract_strided_slice %7 {offsets = [46, 0], sizes = [2, 16], strides = [1, 1]} : vector<72x16xf32> to vector<2x16xf32>
    %c23 = arith.constant 23 : index
    %c0_77 = arith.constant 0 : index
    %c0_78 = arith.constant 0 : index
    %125 = vector.load %arg3[%c23, %c0_77, %c0_78] : memref<36x16x128xf32, #tpu.memory_space<vmem>>, vector<1x16x128xf32>
    %126 = vector.shape_cast %125 : vector<1x16x128xf32> to vector<16x128xf32>
    %cst_79 = arith.constant dense<0.000000e+00> : vector<2x128xf32>
    %127 = tpu.matmul %124, %126, %cst_79 {dimension_numbers = #tpu.dot_dimension_numbers<[1], [0], [0], [1], [0, 0, 1, 1], [], []>} : vector<2x16xf32>, vector<16x128xf32>, vector<2x128xf32> -> vector<2x128xf32>
    %128 = arith.addf %123, %127 : vector<2x128xf32>
    %129 = vector.extract_strided_slice %7 {offsets = [48, 0], sizes = [2, 16], strides = [1, 1]} : vector<72x16xf32> to vector<2x16xf32>
    %c24 = arith.constant 24 : index
    %c0_80 = arith.constant 0 : index
    %c0_81 = arith.constant 0 : index
    %130 = vector.load %arg3[%c24, %c0_80, %c0_81] : memref<36x16x128xf32, #tpu.memory_space<vmem>>, vector<1x16x128xf32>
    %131 = vector.shape_cast %130 : vector<1x16x128xf32> to vector<16x128xf32>
    %cst_82 = arith.constant dense<0.000000e+00> : vector<2x128xf32>
    %132 = tpu.matmul %129, %131, %cst_82 {dimension_numbers = #tpu.dot_dimension_numbers<[1], [0], [0], [1], [0, 0, 1, 1], [], []>} : vector<2x16xf32>, vector<16x128xf32>, vector<2x128xf32> -> vector<2x128xf32>
    %133 = arith.addf %128, %132 : vector<2x128xf32>
    %134 = vector.extract_strided_slice %7 {offsets = [50, 0], sizes = [2, 16], strides = [1, 1]} : vector<72x16xf32> to vector<2x16xf32>
    %c25 = arith.constant 25 : index
    %c0_83 = arith.constant 0 : index
    %c0_84 = arith.constant 0 : index
    %135 = vector.load %arg3[%c25, %c0_83, %c0_84] : memref<36x16x128xf32, #tpu.memory_space<vmem>>, vector<1x16x128xf32>
    %136 = vector.shape_cast %135 : vector<1x16x128xf32> to vector<16x128xf32>
    %cst_85 = arith.constant dense<0.000000e+00> : vector<2x128xf32>
    %137 = tpu.matmul %134, %136, %cst_85 {dimension_numbers = #tpu.dot_dimension_numbers<[1], [0], [0], [1], [0, 0, 1, 1], [], []>} : vector<2x16xf32>, vector<16x128xf32>, vector<2x128xf32> -> vector<2x128xf32>
    %138 = arith.addf %133, %137 : vector<2x128xf32>
    %139 = vector.extract_strided_slice %7 {offsets = [52, 0], sizes = [2, 16], strides = [1, 1]} : vector<72x16xf32> to vector<2x16xf32>
    %c26 = arith.constant 26 : index
    %c0_86 = arith.constant 0 : index
    %c0_87 = arith.constant 0 : index
    %140 = vector.load %arg3[%c26, %c0_86, %c0_87] : memref<36x16x128xf32, #tpu.memory_space<vmem>>, vector<1x16x128xf32>
    %141 = vector.shape_cast %140 : vector<1x16x128xf32> to vector<16x128xf32>
    %cst_88 = arith.constant dense<0.000000e+00> : vector<2x128xf32>
    %142 = tpu.matmul %139, %141, %cst_88 {dimension_numbers = #tpu.dot_dimension_numbers<[1], [0], [0], [1], [0, 0, 1, 1], [], []>} : vector<2x16xf32>, vector<16x128xf32>, vector<2x128xf32> -> vector<2x128xf32>
    %143 = arith.addf %138, %142 : vector<2x128xf32>
    %144 = vector.extract_strided_slice %7 {offsets = [54, 0], sizes = [2, 16], strides = [1, 1]} : vector<72x16xf32> to vector<2x16xf32>
    %c27 = arith.constant 27 : index
    %c0_89 = arith.constant 0 : index
    %c0_90 = arith.constant 0 : index
    %145 = vector.load %arg3[%c27, %c0_89, %c0_90] : memref<36x16x128xf32, #tpu.memory_space<vmem>>, vector<1x16x128xf32>
    %146 = vector.shape_cast %145 : vector<1x16x128xf32> to vector<16x128xf32>
    %cst_91 = arith.constant dense<0.000000e+00> : vector<2x128xf32>
    %147 = tpu.matmul %144, %146, %cst_91 {dimension_numbers = #tpu.dot_dimension_numbers<[1], [0], [0], [1], [0, 0, 1, 1], [], []>} : vector<2x16xf32>, vector<16x128xf32>, vector<2x128xf32> -> vector<2x128xf32>
    %148 = arith.addf %143, %147 : vector<2x128xf32>
    %149 = vector.extract_strided_slice %7 {offsets = [56, 0], sizes = [2, 16], strides = [1, 1]} : vector<72x16xf32> to vector<2x16xf32>
    %c28 = arith.constant 28 : index
    %c0_92 = arith.constant 0 : index
    %c0_93 = arith.constant 0 : index
    %150 = vector.load %arg3[%c28, %c0_92, %c0_93] : memref<36x16x128xf32, #tpu.memory_space<vmem>>, vector<1x16x128xf32>
    %151 = vector.shape_cast %150 : vector<1x16x128xf32> to vector<16x128xf32>
    %cst_94 = arith.constant dense<0.000000e+00> : vector<2x128xf32>
    %152 = tpu.matmul %149, %151, %cst_94 {dimension_numbers = #tpu.dot_dimension_numbers<[1], [0], [0], [1], [0, 0, 1, 1], [], []>} : vector<2x16xf32>, vector<16x128xf32>, vector<2x128xf32> -> vector<2x128xf32>
    %153 = arith.addf %148, %152 : vector<2x128xf32>
    %154 = vector.extract_strided_slice %7 {offsets = [58, 0], sizes = [2, 16], strides = [1, 1]} : vector<72x16xf32> to vector<2x16xf32>
    %c29 = arith.constant 29 : index
    %c0_95 = arith.constant 0 : index
    %c0_96 = arith.constant 0 : index
    %155 = vector.load %arg3[%c29, %c0_95, %c0_96] : memref<36x16x128xf32, #tpu.memory_space<vmem>>, vector<1x16x128xf32>
    %156 = vector.shape_cast %155 : vector<1x16x128xf32> to vector<16x128xf32>
    %cst_97 = arith.constant dense<0.000000e+00> : vector<2x128xf32>
    %157 = tpu.matmul %154, %156, %cst_97 {dimension_numbers = #tpu.dot_dimension_numbers<[1], [0], [0], [1], [0, 0, 1, 1], [], []>} : vector<2x16xf32>, vector<16x128xf32>, vector<2x128xf32> -> vector<2x128xf32>
    %158 = arith.addf %153, %157 : vector<2x128xf32>
    %159 = vector.extract_strided_slice %7 {offsets = [60, 0], sizes = [2, 16], strides = [1, 1]} : vector<72x16xf32> to vector<2x16xf32>
    %c30 = arith.constant 30 : index
    %c0_98 = arith.constant 0 : index
    %c0_99 = arith.constant 0 : index
    %160 = vector.load %arg3[%c30, %c0_98, %c0_99] : memref<36x16x128xf32, #tpu.memory_space<vmem>>, vector<1x16x128xf32>
    %161 = vector.shape_cast %160 : vector<1x16x128xf32> to vector<16x128xf32>
    %cst_100 = arith.constant dense<0.000000e+00> : vector<2x128xf32>
    %162 = tpu.matmul %159, %161, %cst_100 {dimension_numbers = #tpu.dot_dimension_numbers<[1], [0], [0], [1], [0, 0, 1, 1], [], []>} : vector<2x16xf32>, vector<16x128xf32>, vector<2x128xf32> -> vector<2x128xf32>
    %163 = arith.addf %158, %162 : vector<2x128xf32>
    %164 = vector.extract_strided_slice %7 {offsets = [62, 0], sizes = [2, 16], strides = [1, 1]} : vector<72x16xf32> to vector<2x16xf32>
    %c31 = arith.constant 31 : index
    %c0_101 = arith.constant 0 : index
    %c0_102 = arith.constant 0 : index
    %165 = vector.load %arg3[%c31, %c0_101, %c0_102] : memref<36x16x128xf32, #tpu.memory_space<vmem>>, vector<1x16x128xf32>
    %166 = vector.shape_cast %165 : vector<1x16x128xf32> to vector<16x128xf32>
    %cst_103 = arith.constant dense<0.000000e+00> : vector<2x128xf32>
    %167 = tpu.matmul %164, %166, %cst_103 {dimension_numbers = #tpu.dot_dimension_numbers<[1], [0], [0], [1], [0, 0, 1, 1], [], []>} : vector<2x16xf32>, vector<16x128xf32>, vector<2x128xf32> -> vector<2x128xf32>
    %168 = arith.addf %163, %167 : vector<2x128xf32>
    %169 = vector.extract_strided_slice %7 {offsets = [64, 0], sizes = [2, 16], strides = [1, 1]} : vector<72x16xf32> to vector<2x16xf32>
    %c32 = arith.constant 32 : index
    %c0_104 = arith.constant 0 : index
    %c0_105 = arith.constant 0 : index
    %170 = vector.load %arg3[%c32, %c0_104, %c0_105] : memref<36x16x128xf32, #tpu.memory_space<vmem>>, vector<1x16x128xf32>
    %171 = vector.shape_cast %170 : vector<1x16x128xf32> to vector<16x128xf32>
    %cst_106 = arith.constant dense<0.000000e+00> : vector<2x128xf32>
    %172 = tpu.matmul %169, %171, %cst_106 {dimension_numbers = #tpu.dot_dimension_numbers<[1], [0], [0], [1], [0, 0, 1, 1], [], []>} : vector<2x16xf32>, vector<16x128xf32>, vector<2x128xf32> -> vector<2x128xf32>
    %173 = arith.addf %168, %172 : vector<2x128xf32>
    %174 = vector.extract_strided_slice %7 {offsets = [66, 0], sizes = [2, 16], strides = [1, 1]} : vector<72x16xf32> to vector<2x16xf32>
    %c33 = arith.constant 33 : index
    %c0_107 = arith.constant 0 : index
    %c0_108 = arith.constant 0 : index
    %175 = vector.load %arg3[%c33, %c0_107, %c0_108] : memref<36x16x128xf32, #tpu.memory_space<vmem>>, vector<1x16x128xf32>
    %176 = vector.shape_cast %175 : vector<1x16x128xf32> to vector<16x128xf32>
    %cst_109 = arith.constant dense<0.000000e+00> : vector<2x128xf32>
    %177 = tpu.matmul %174, %176, %cst_109 {dimension_numbers = #tpu.dot_dimension_numbers<[1], [0], [0], [1], [0, 0, 1, 1], [], []>} : vector<2x16xf32>, vector<16x128xf32>, vector<2x128xf32> -> vector<2x128xf32>
    %178 = arith.addf %173, %177 : vector<2x128xf32>
    %179 = vector.extract_strided_slice %7 {offsets = [68, 0], sizes = [2, 16], strides = [1, 1]} : vector<72x16xf32> to vector<2x16xf32>
    %c34 = arith.constant 34 : index
    %c0_110 = arith.constant 0 : index
    %c0_111 = arith.constant 0 : index
    %180 = vector.load %arg3[%c34, %c0_110, %c0_111] : memref<36x16x128xf32, #tpu.memory_space<vmem>>, vector<1x16x128xf32>
    %181 = vector.shape_cast %180 : vector<1x16x128xf32> to vector<16x128xf32>
    %cst_112 = arith.constant dense<0.000000e+00> : vector<2x128xf32>
    %182 = tpu.matmul %179, %181, %cst_112 {dimension_numbers = #tpu.dot_dimension_numbers<[1], [0], [0], [1], [0, 0, 1, 1], [], []>} : vector<2x16xf32>, vector<16x128xf32>, vector<2x128xf32> -> vector<2x128xf32>
    %183 = arith.addf %178, %182 : vector<2x128xf32>
    %184 = vector.extract_strided_slice %7 {offsets = [70, 0], sizes = [2, 16], strides = [1, 1]} : vector<72x16xf32> to vector<2x16xf32>
    %c35 = arith.constant 35 : index
    %c0_113 = arith.constant 0 : index
    %c0_114 = arith.constant 0 : index
    %185 = vector.load %arg3[%c35, %c0_113, %c0_114] : memref<36x16x128xf32, #tpu.memory_space<vmem>>, vector<1x16x128xf32>
    %186 = vector.shape_cast %185 : vector<1x16x128xf32> to vector<16x128xf32>
    %cst_115 = arith.constant dense<0.000000e+00> : vector<2x128xf32>
    %187 = tpu.matmul %184, %186, %cst_115 {dimension_numbers = #tpu.dot_dimension_numbers<[1], [0], [0], [1], [0, 0, 1, 1], [], []>} : vector<2x16xf32>, vector<16x128xf32>, vector<2x128xf32> -> vector<2x128xf32>
    %188 = arith.addf %183, %187 : vector<2x128xf32>
    %c0_116 = arith.constant 0 : index
    %c0_117 = arith.constant 0 : index
    %189 = vector.load %arg4[%c0_116, %c0_117] : memref<1x128xf32, #tpu.memory_space<vmem>>, vector<1x128xf32>
    %190 = vector.broadcast %189 : vector<1x128xf32> to vector<2x128xf32>
    %191 = arith.addf %188, %190 : vector<2x128xf32>
    %cst_118 = arith.constant 0.000000e+00 : f32
    %192 = vector.broadcast %cst_118 : f32 to vector<2x128xf32>
    %193 = arith.maximumf %191, %192 : vector<2x128xf32>
    %c0_119 = arith.constant 0 : index
    %c0_120 = arith.constant 0 : index
    %194 = vector.load %arg5[%c0_119, %c0_120] : memref<128x256xf32, #tpu.memory_space<vmem>>, vector<128x256xf32>
    %cst_121 = arith.constant dense<0.000000e+00> : vector<2x256xf32>
    %195 = tpu.matmul %193, %194, %cst_121 {dimension_numbers = #tpu.dot_dimension_numbers<[1], [0], [0], [1], [0, 0, 1, 1], [], []>} : vector<2x128xf32>, vector<128x256xf32>, vector<2x256xf32> -> vector<2x256xf32>
    %c0_122 = arith.constant 0 : index
    %c0_123 = arith.constant 0 : index
    %196 = vector.load %arg6[%c0_122, %c0_123] : memref<1x256xf32, #tpu.memory_space<vmem>>, vector<1x256xf32>
    %197 = vector.broadcast %196 : vector<1x256xf32> to vector<2x256xf32>
    %198 = arith.addf %195, %197 : vector<2x256xf32>
    %cst_124 = arith.constant 0.000000e+00 : f32
    %199 = vector.broadcast %cst_124 : f32 to vector<2x256xf32>
    %200 = arith.maximumf %198, %199 : vector<2x256xf32>
    %c0_125 = arith.constant 0 : index
    %c0_126 = arith.constant 0 : index
    %201 = vector.load %arg7[%c0_125, %c0_126] : memref<256x128xf32, #tpu.memory_space<vmem>>, vector<256x128xf32>
    %cst_127 = arith.constant dense<0.000000e+00> : vector<2x128xf32>
    %202 = tpu.matmul %200, %201, %cst_127 {dimension_numbers = #tpu.dot_dimension_numbers<[1], [0], [0], [1], [0, 0, 1, 1], [], []>} : vector<2x256xf32>, vector<256x128xf32>, vector<2x128xf32> -> vector<2x128xf32>
    %c0_128 = arith.constant 0 : index
    %c0_129 = arith.constant 0 : index
    %203 = vector.load %arg8[%c0_128, %c0_129] : memref<1x128xf32, #tpu.memory_space<vmem>>, vector<1x128xf32>
    %204 = vector.broadcast %203 : vector<1x128xf32> to vector<2x128xf32>
    %205 = arith.addf %202, %204 : vector<2x128xf32>
    %c0_130 = arith.constant 0 : index
    %c0_131 = arith.constant 0 : index
    %206 = vector.load %arg9[%c0_130, %c0_131] : memref<2x128xf32, #tpu.memory_space<vmem>>, vector<2x128xf32>
    tpu.vector_store %arg9[%c0_130, %c0_131], %205 {strides = array<i32>} : memref<2x128xf32, #tpu.memory_space<vmem>>, vector<2x128xf32>,
    return
  }
}

</mosaic_0001>

<bundles_post_ra>
// kernel: dqn_agent_forward.1
= control target key start
LH: loop header
LB: loop body
LE: loop exit
PB: predicated region body
PF: predicated region fallthrough
CT: control target
= control target key end

     0   :  { %s4671_s0 = inlined_call_operand.vmem [shape: f32[72,256], index: 0, kind: input, shape index: {}]   ;;  %s4672_s1 = inlined_call_operand.vmem [shape: f32[256,16], index: 1, kind: input, shape index: {}]   ;;  %s4673_s2 = inlined_call_operand.vmem [shape: f32[1,16], index: 2, kind: input, shape index: {}]   ;;  %s4674_s3 = inlined_call_operand.vmem [shape: f32[36,16,128], index: 3, kind: input, shape index: {}]   ;;  %s4675_s4 = inlined_call_operand.vmem [shape: f32[1,128], index: 4, kind: input, shape index: {}]   ;;  %s4676_s5 = inlined_call_operand.vmem [shape: f32[128,256], index: 5, kind: input, shape index: {}]   ;;  %s4677_s6 = inlined_call_operand.vmem [shape: f32[1,256], index: 6, kind: input, shape index: {}]   ;;  %s4678_s7 = inlined_call_operand.vmem [shape: f32[256,128], index: 7, kind: input, shape index: {}]   ;;  %s4679_s8 = inlined_call_operand.vmem [shape: f32[1,128], index: 8, kind: input, shape index: {}]   ;;  %s4680_s9 = inlined_call_operand.hbm [shape: f32[2,128], index: 9, kind: output, shape index: {}]  }
   0x1   :  { %v82_v0 = vld [vmem:[%s4672_s1 + $0xf8] sm:$0xff]  ;;  %v81_v2 = vld [vmem:[%s4672_s1 + $0xf0] sm:$0xff]  ;;  %v80_v4 = vld [vmem:[%s4672_s1 + $0xe8] sm:$0xff] }
   0x2   :  { %v66_v1 = vld [vmem:[%s4672_s1 + $0x78] sm:$0xff]  ;;  %3338 = vmatprep.subr.mxu0 %v82_v0  ;;  %v65_v3 = vld [vmem:[%s4672_s1 + $0x70] sm:$0xff]  ;;  %v64_v5 = vld [vmem:[%s4672_s1 + $0x68] sm:$0xff] }
   0x3   :  { %3339 = vmatpush3.msra.mxu0 %v66_v1  ;;  %v79_v6 = vld [vmem:[%s4672_s1 + $0xe0] sm:$0xff]  ;;  %v78_v8 = vld [vmem:[%s4672_s1 + $0xd8] sm:$0xff]  ;;  %v77_v10 = vld [vmem:[%s4672_s1 + $0xd0] sm:$0xff] }
   0x4   :  { %3340 = vmatprep.subr.mxu0 %v81_v2  ;;  %v63_v7 = vld [vmem:[%s4672_s1 + $0x60] sm:$0xff]  ;;  %v62_v9 = vld [vmem:[%s4672_s1 + $0x58] sm:$0xff]  ;;  %v61_v11 = vld [vmem:[%s4672_s1 + $0x50] sm:$0xff] }
   0x5   :  { %3341 = vmatpush3.msra.mxu0 %v65_v3  ;;  %v76_v12 = vld [vmem:[%s4672_s1 + $0xc8] sm:$0xff]  ;;  %v75_v15 = vld [vmem:[%s4672_s1 + $0xc0] sm:$0xff]  ;;  %v74_v17 = vld [vmem:[%s4672_s1 + $0xb8] sm:$0xff] }
   0x6   :  { %3342 = vmatprep.subr.mxu0 %v80_v4  ;;  %v34_v13 = vld [vmem:[%s4671_s0 + $0x8] sm:$0xff]  ;;  %v59_v16 = vld [vmem:[%s4672_s1 + $0x40] sm:$0xff]  ;;  %v58_v18 = vld [vmem:[%s4672_s1 + $0x38] sm:$0xff] }
   0x7   :  { %3343 = vmatpush3.msra.mxu0 %v64_v5  ;;  %v60_v14 = vld [vmem:[%s4672_s1 + $0x48] sm:$0xff]  ;;  %154 = vmatprep.mubr.f32.mxu0 %v34_v13  ;;  %v73_v19 = vld [vmem:[%s4672_s1 + $0xb0] sm:$0xff] }
   0x8   :  { %3344 = vmatprep.subr.mxu0 %v79_v6 }
   0x9   :  { %3345 = vmatpush3.msra.mxu0 %v63_v7 }
   0xa   :  { %3346 = vmatprep.subr.mxu0 %v78_v8 }
   0xb   :  { %3347 = vmatpush3.msra.mxu0 %v62_v9 }
   0xc   :  { %3348 = vmatprep.subr.mxu0 %v77_v10 }
   0xd   :  { %3349 = vmatpush3.msra.mxu0 %v61_v11 }
   0xe   :  { %3350 = vmatprep.subr.mxu0 %v76_v12 }
   0xf   :  { %3351 = vmatpush3.msra.mxu0 %v60_v14 }
  0x10   :  { %3352 = vmatprep.subr.mxu0 %v75_v15 }
  0x11   :  { %3353 = vmatpush3.msra.mxu0 %v59_v16 }
  0x12   :  { %14 = vsyncpa [#allocation3], 0  ;;  %3354 = vmatprep.subr.mxu0 %v74_v17  ;;  %v57_v20 = vld [vmem:[%s4672_s1 + $0x30] sm:$0xff]  ;;  %v72_v21 = vld [vmem:[%s4672_s1 + $0xa8] sm:$0xff]  ;;  %v3817_v50 = vmov 0.0   ;;  %vm3818_vm0 = vmmov 0  }
  0x13   :  { %3355 = vmatpush3.msra.mxu0 %v58_v18  ;;  %v56_v22 = vld [vmem:[%s4672_s1 + $0x28] sm:$0xff]  ;;  %v71_v23 = vld [vmem:[%s4672_s1 + $0xa0] sm:$0xff]  ;;  %v70_v25 = vld [vmem:[%s4672_s1 + $0x98] sm:$0xff]  ;;  %3540 = vmatprep.subr.mxu1 %v3817_v50  ;;  %vm216_vm1 = vcmask 130048  }
  0x14   :  { %3356 = vmatprep.subr.mxu0 %v73_v19  ;;  %v55_v24 = vld [vmem:[%s4672_s1 + $0x20] sm:$0xff]  ;;  %v54_v26 = vld [vmem:[%s4672_s1 + $0x18] sm:$0xff]  ;;  %v69_v27 = vld [vmem:[%s4672_s1 + $0x90] sm:$0xff]  ;;  %3544 = vmatprep.mubr.msk.f32.mxu1 %vm3818_vm0, %v3817_v50 }
  0x15   :  { %3357 = vmatpush3.msra.mxu0 %v57_v20  ;;  %v53_v28 = vld [vmem:[%s4672_s1 + $0x10] sm:$0xff]  ;;  %v68_v29 = vld [vmem:[%s4672_s1 + $0x88] sm:$0xff]  ;;  %v67_v31 = vld [vmem:[%s4672_s1 + $0x80] sm:$0xff] }
  0x16   :  { %3358 = vmatprep.subr.mxu0 %v72_v21  ;;  %v52_v30 = vld [vmem:[%s4672_s1 + $0x8] sm:$0xff]  ;;  %v51_v32 = vld [vmem:[%s4672_s1] sm:$0xff]  ;;  %v36_v34 = vld [vmem:[%s4671_s0 + $0x18] sm:$0xff] }
  0x17   :  { %3359 = vmatpush3.msra.mxu0 %v56_v22  ;;  %v33_v33 = vld [vmem:[%s4671_s0] sm:$0xff]  ;;  %v35_v35 = vld [vmem:[%s4671_s0 + $0x10] sm:$0xff]  ;;  %v38_v36 = vld [vmem:[%s4671_s0 + $0x28] sm:$0xff] }
  0x18   :  { %3360 = vmatprep.subr.mxu0 %v71_v23  ;;  %v37_v37 = vld [vmem:[%s4671_s0 + $0x20] sm:$0xff]  ;;  %v40_v38 = vld [vmem:[%s4671_s0 + $0x38] sm:$0xff]  ;;  %v39_v39 = vld [vmem:[%s4671_s0 + $0x30] sm:$0xff] }
  0x19   :  { %3361 = vmatpush3.msra.mxu0 %v55_v24  ;;  %v42_v40 = vld [vmem:[%s4671_s0 + $0x48] sm:$0xff]  ;;  %v41_v41 = vld [vmem:[%s4671_s0 + $0x40] sm:$0xff]  ;;  %v44_v42 = vld [vmem:[%s4671_s0 + $0x58] sm:$0xff] }
  0x1a   :  { %3362 = vmatprep.subr.mxu0 %v70_v25  ;;  %v43_v43 = vld [vmem:[%s4671_s0 + $0x50] sm:$0xff]  ;;  %v46_v44 = vld [vmem:[%s4671_s0 + $0x68] sm:$0xff]  ;;  %v45_v45 = vld [vmem:[%s4671_s0 + $0x60] sm:$0xff] }
  0x1b   :  { %3363 = vmatpush3.msra.mxu0 %v54_v26  ;;  %v48_v46 = vld [vmem:[%s4671_s0 + $0x78] sm:$0xff]  ;;  %v47_v47 = vld [vmem:[%s4671_s0 + $0x70] sm:$0xff]  ;;  %v50_v48 = vld [vmem:[%s4671_s0 + $0x88] sm:$0xff] }
  0x1c   :  { %3364 = vmatprep.subr.mxu0 %v69_v27  ;;  %v49_v49 = vld [vmem:[%s4671_s0 + $0x80] sm:$0xff]  ;;  %v3231_v51 = vld [vmem:[%s4674_s3 + $0x18] sm:$0xff]  ;;  %v3230_v52 = vld [vmem:[%s4674_s3 + $0x10] sm:$0xff] }
  0x1d   :  { %3365 = vmatpush3.msra.mxu0 %v53_v28  ;;  %3541 = vmatpush3.msra.mxu1 %v3231_v51  ;;  %v3277_v53 = vld [vmem:[%s4674_s3 + $0x108] sm:$0xff]  ;;  %v3276_v54 = vld [vmem:[%s4674_s3 + $0x100] sm:$0xff]  ;;  %v3238_v11 = vld [vmem:[%s4674_s3 + $0x38] sm:$0xff] }
  0x1e   :  { %3366 = vmatprep.subr.mxu0 %v68_v29  ;;  %3542 = vmatprep.subr.mxu1 %v3817_v50  ;;  %v4045_v56 = vld [vmem:[%s4673_s2] ss:$0 sm:$0xff]  ;;  %v210_v1 = vld [vmem:[%s4674_s3 + $0x8] sm:$0xff]  ;;  %v3237_v13 = vld [vmem:[%s4674_s3 + $0x30] sm:$0xff] }
  0x1f   :  { %3367 = vmatpush3.msra.mxu0 %v52_v30  ;;  %3543 = vmatpush3.msra.mxu1 %v3230_v52  ;;  %v209_v3 = vld [vmem:[%s4674_s3] sm:$0xff]  ;;  %v3235_v5 = vld [vmem:[%s4674_s3 + $0x28] sm:$0xff]  ;;  %v3244_v23 = vld [vmem:[%s4674_s3 + $0x58] sm:$0xff] }
  0x20   :  { %3368 = vmatprep.subr.mxu0 %v67_v31  ;;  %3547 = vmatprep.subr.mxu1 %v3817_v50  ;;  %v3234_v7 = vld [vmem:[%s4674_s3 + $0x20] sm:$0xff]  ;;  %v3241_v17 = vld [vmem:[%s4674_s3 + $0x48] sm:$0xff]  ;;  %v3243_v24 = vld [vmem:[%s4674_s3 + $0x50] sm:$0xff] }
  0x21   :  { %3369 = vmatpush3.msra.mxu0 %v51_v32  ;;  %v3240_v19 = vld [vmem:[%s4674_s3 + $0x40] sm:$0xff]  ;;  %v3283_v21 = vld [vmem:[%s4674_s3 + $0x128] sm:$0xff] }
  0x22   :  { %155 = vmatmul.mubr.f32.vlgmr.msra.gmra.mxu0 %v33_v33  ;;  %3652 = vmatprep.subr.mxu0 %v3817_v50  ;;  %v3282_v26 = vld [vmem:[%s4674_s3 + $0x120] sm:$0xff]  ;;  %v3247_v28 = vld [vmem:[%s4674_s3 + $0x68] sm:$0xff] }
  0x23   :  { %159 = vmatprep.mubr.f32.mxu0 %v36_v34  ;;  %3653 = vmatpush3.msra.mxu0 %v3277_v53  ;;  %v3246_v30 = vld [vmem:[%s4674_s3 + $0x60] sm:$0xff]  ;;  %v3250_v34 = vld [vmem:[%s4674_s3 + $0x78] sm:$0xff]  ;;  %v3295_v52 = vld [vmem:[%s4674_s3 + $0x168] sm:$0xff] }
  0x24   :  { %3654 = vmatprep.subr.mxu0 %v3817_v50  ;;  %v3258_v51 = vld [vmem:[%s4674_s3 + $0xa0] sm:$0xff] }
  0x25   :  { %3655 = vmatpush3.msra.mxu0 %v3276_v54 }
  0x26   :  { %160 = vmatmul.mubr.f32.gmra.mxu0 %v35_v35  ;;  %3666 = vmatprep.subr.mxu0 %v3817_v50 }
  0x27   :  { %164 = vmatprep.mubr.f32.mxu0 %v38_v36  ;;  %v3249_v36 = vld [vmem:[%s4674_s3 + $0x70] sm:$0xff] }
  0x2a   :  { %165 = vmatmul.mubr.f32.gmra.mxu0 %v37_v37  ;;  %v3289_v37 = vld [vmem:[%s4674_s3 + $0x148] sm:$0xff] }
  0x2b   :  { %169 = vmatprep.mubr.f32.mxu0 %v40_v38 }
  0x2e   :  { %170 = vmatmul.mubr.f32.gmra.mxu0 %v39_v39 }
  0x2f   :  { %174 = vmatprep.mubr.f32.mxu0 %v42_v40  ;;  %v3253_v40 = vld [vmem:[%s4674_s3 + $0x88] sm:$0xff] }
  0x32   :  { %175 = vmatmul.mubr.f32.gmra.mxu0 %v41_v41 }
  0x33   :  { %179 = vmatprep.mubr.f32.mxu0 %v44_v42  ;;  %v3252_v42 = vld [vmem:[%s4674_s3 + $0x80] sm:$0xff] }
  0x36   :  { %180 = vmatmul.mubr.f32.gmra.mxu0 %v43_v43  ;;  %v3288_v43 = vld [vmem:[%s4674_s3 + $0x140] sm:$0xff] }
  0x37   :  { %184 = vmatprep.mubr.f32.mxu0 %v46_v44 }
  0x3a   :  { %185 = vmatmul.mubr.f32.gmra.mxu0 %v45_v45  ;;  %v3256_v45 = vld [vmem:[%s4674_s3 + $0x98] sm:$0xff] }
  0x3b   :  { %189 = vmatprep.mubr.f32.mxu0 %v48_v46 }
  0x3e   :  { %190 = vmatmul.mubr.f32.gmra.mxu0 %v47_v47  ;;  %v3255_v47 = vld [vmem:[%s4674_s3 + $0x90] sm:$0xff] }
  0x3f   :  { %194 = vmatprep.mubr.f32.mxu0 %v50_v48 }
  0x42   :  { %195 = vmatmul.mubr.f32.gmra.mxu0 %v49_v49  ;;  %v3259_v49 = vld [vmem:[%s4674_s3 + $0xa8] sm:$0xff] }
  0x43   :  { %3656 = vmatprep.mubr.msk.f32.mxu0 %vm3818_vm0, %v3817_v50 }
  0xe2   :  { %v3370_v55 = vpop.f32.mrf.mxu0 }
  0xe4   :  { %v3371_v57 = vpop.f32.mrf.mxu0 }
  0xe5   :  { %v3372_v58 = vadd.f32 %v3371_v57, %v3370_v55  ;;  %v3262_v55 = vld [vmem:[%s4674_s3 + $0xb8] sm:$0xff]  ;;  %v3261_v57 = vld [vmem:[%s4674_s3 + $0xb0] sm:$0xff] }
  0xe6   :  { %v3373_v59 = vpop.f32.mrf.mxu0 }
  0xe7   :  { %v157_v60 = vadd.f32 %v3372_v58, %v4045_v56 }
  0xe8   :  { %v3374_v61 = vpop.f32.mrf.mxu0 }
  0xe9   :  { %v200_v62 = vmax.f32 %v157_v60, 0.0  ;;  %v3375_v10 = vadd.f32 %v3374_v61, %v3373_v59  ;;  %v3294_v59 = vld [vmem:[%s4674_s3 + $0x160] sm:$0xff] }
  0xea   :  { %v4048_v63 = vpop.f32.mrf.mxu0 }
  0xeb   :  { %v215_v0 = vrot.slane %v200_v62, 2  ;;  %v364_v9 = vrot.slane %v200_v62, 4  ;;  %v441_v15 = vrot.slane %v200_v62, 6  ;;  %v162_v16 = vadd.f32 %v3375_v10, %v4045_v56  ;;  %v3270_v10 = vld [vmem:[%s4674_s3 + $0xe0] sm:$0xff] }
  0xec   :  { %v4053_v2 = vpop.f32.mrf.mxu0 }
  0xed   :  { %3545 = vmatmul.mubr.msk.f32.vlgmr.msra.gmra.mxu1 %vm216_vm1, %v215_v0  ;;  %v201_v22 = vmax.f32 %v162_v16, 0.0  ;;  %v3378_v33 = vadd.f32 %v4053_v2, %v4048_v63  ;;  %v3264_v0 = vld [vmem:[%s4674_s3 + $0xc0] sm:$0xff] }
  0xee   :  { %3548 = vmatpush3.msra.mxu1 %v210_v1  ;;  %3551 = vmatprep.mubr.msk.f32.mxu1 %vm3818_vm0, %v3817_v50  ;;  %v4061_v4 = vpop.f32.mrf.mxu0 }
  0xef   :  { %3549 = vmatprep.subr.mxu1 %v3817_v50  ;;  %v595_v27 = vrot.slane %v201_v22, 2  ;;  %v672_v32 = vrot.slane %v201_v22, 4  ;;  %v749_v38 = vrot.slane %v201_v22, 6  ;;  %v167_v39 = vadd.f32 %v3378_v33, %v4045_v56  ;;  %v3297_v33 = vld [vmem:[%s4674_s3 + $0x170] sm:$0xff] }
  0xf0   :  { %3550 = vmatpush3.msra.mxu1 %v209_v3  ;;  %v4067_v6 = vpop.f32.mrf.mxu0  ;;  %v3268_v3 = vld [vmem:[%s4674_s3 + $0xd8] sm:$0xff] }
  0xf1   :  { %3554 = vmatprep.subr.mxu1 %v3817_v50  ;;  %3552 = vmatmul.mubr.msk.f32.vlgmr.msra.gmra.mxu1 %vm216_vm1, %v200_v62  ;;  %v202_v44 = vmax.f32 %v167_v39, 0.0  ;;  %v3381_v54 = vadd.f32 %v4067_v6, %v4061_v4  ;;  %v3265_v62 = vld [vmem:[%s4674_s3 + $0xc8] sm:$0xff]  ;;  %v3303_v39 = vld [vmem:[%s4674_s3 + $0x190] sm:$0xff] }
  0xf2   :  { %3555 = vmatpush3.msra.mxu1 %v3235_v5  ;;  %3558 = vmatprep.mubr.msk.f32.mxu1 %vm3818_vm0, %v3817_v50  ;;  %v3382_v8 = vpop.f32.mrf.mxu0  ;;  %v3267_v5 = vld [vmem:[%s4674_s3 + $0xd0] sm:$0xff]  ;;  %v3301_v6 = vld [vmem:[%s4674_s3 + $0x188] sm:$0xff] }
  0xf3   :  { %3556 = vmatprep.subr.mxu1 %v3817_v50  ;;  %v903_v48 = vrot.slane %v202_v44, 2  ;;  %v980_v53 = vrot.slane %v202_v44, 4  ;;  %v1057_v60 = vrot.slane %v202_v44, 6  ;;  %v172_v61 = vadd.f32 %v3381_v54, %v4045_v56  ;;  %v3325_v54 = vld [vmem:[%s4674_s3 + $0x208] sm:$0xff] }
  0xf4   :  { %3557 = vmatpush3.msra.mxu1 %v3234_v7  ;;  %v3383_v12 = vpop.f32.mrf.mxu0 }
  0xf5   :  { %3561 = vmatprep.subr.mxu1 %v3817_v50  ;;  %3559 = vmatmul.mubr.msk.f32.vlgmr.msra.gmra.mxu1 %vm216_vm1, %v364_v9  ;;  %v3384_v14 = vadd.f32 %v3383_v12, %v3382_v8  ;;  %v203_v2 = vmax.f32 %v172_v61, 0.0  ;;  %v3271_v8 = vld [vmem:[%s4674_s3 + $0xe8] sm:$0xff]  ;;  %v3321_v61 = vld [vmem:[%s4674_s3 + $0x1f0] sm:$0xff] }
  0xf6   :  { %3562 = vmatpush3.msra.mxu1 %v3238_v11  ;;  %3565 = vmatprep.mubr.msk.f32.mxu1 %vm3818_vm0, %v3817_v50  ;;  %v3385_v25 = vpop.f32.mrf.mxu0  ;;  %v3300_v11 = vld [vmem:[%s4674_s3 + $0x180] sm:$0xff] }
  0xf7   :  { %3563 = vmatprep.subr.mxu1 %v3817_v50  ;;  %v177_v18 = vadd.f32 %v3384_v14, %v4045_v56  ;;  %v1211_v7 = vrot.slane %v203_v2, 2  ;;  %v1288_v12 = vrot.slane %v203_v2, 4  ;;  %v1365_v16 = vrot.slane %v203_v2, 6 }
  0xf8   :  { %3564 = vmatpush3.msra.mxu1 %v3237_v13  ;;  %v3386_v31 = vpop.f32.mrf.mxu0  ;;  %v3274_v13 = vld [vmem:[%s4674_s3 + $0xf8] sm:$0xff] }
  0xf9   :  { %3568 = vmatprep.subr.mxu1 %v3817_v50  ;;  %3566 = vmatmul.mubr.msk.f32.vlgmr.msra.gmra.mxu1 %vm216_vm1, %v441_v15  ;;  %v4098_v20 = vmax.f32 %v177_v18, 0.0  ;;  %v3387_v35 = vadd.f32 %v3386_v31, %v3385_v25  ;;  %v3273_v15 = vld [vmem:[%s4674_s3 + $0xf0] sm:$0xff]  ;;  %v3306_v25 = vld [vmem:[%s4674_s3 + $0x1a0] sm:$0xff] }
  0xfa   :  { %3569 = vmatpush3.msra.mxu1 %v3241_v17  ;;  %3572 = vmatprep.mubr.msk.f32.mxu1 %vm3818_vm0, %v3817_v50  ;;  %v3388_v58 = vpop.f32.mrf.mxu0  ;;  %v3280_v17 = vld [vmem:[%s4674_s3 + $0x118] sm:$0xff]  ;;  %v3279_v18 = vld [vmem:[%s4674_s3 + $0x110] sm:$0xff] }
  0xfb   :  { %3570 = vmatprep.subr.mxu1 %v3817_v50  ;;  %3657 = vmatmul.mubr.msk.f32.vlgmr.msra.gmra.mxu0 %vm216_vm1, %v4098_v20  ;;  %v1596_v29 = vrot.slane %v4098_v20, 4  ;;  %v182_v41 = vadd.f32 %v3387_v35, %v4045_v56 }
  0xfc   :  { %3571 = vmatpush3.msra.mxu1 %v3240_v19  ;;  %3667 = vmatpush3.msra.mxu0 %v3283_v21  ;;  %v3389_v1 = vpop.f32.mrf.mxu0  ;;  %v3307_v19 = vld [vmem:[%s4674_s3 + $0x1a8] sm:$0xff]  ;;  %v1519_v21 = vrot.slane %v4098_v20, 2 }
  0xfd   :  { %3575 = vmatprep.subr.mxu1 %v3817_v50  ;;  %3573 = vmatmul.mubr.msk.f32.vlgmr.msra.gmra.mxu1 %vm216_vm1, %v201_v22  ;;  %v4175_v46 = vmax.f32 %v182_v41, 0.0  ;;  %v3390_v4 = vadd.f32 %v3389_v1, %v3388_v58  ;;  %v3286_v22 = vld [vmem:[%s4674_s3 + $0x138] sm:$0xff] }
  0xfe   :  { %3576 = vmatpush3.msra.mxu1 %v3244_v23  ;;  %3579 = vmatprep.mubr.msk.f32.mxu1 %vm3818_vm0, %v3817_v50  ;;  %v3391_v23 = vpop.f32.mrf.mxu0  ;;  %v3328_v1 = vld [vmem:[%s4674_s3 + $0x218] sm:$0xff] }
  0xff   :  { %3577 = vmatprep.subr.mxu1 %v3817_v50  ;;  %3668 = vmatprep.subr.mxu0 %v3817_v50  ;;  %v1904_v63 = vrot.slane %v4175_v46, 4  ;;  %v187_v9 = vadd.f32 %v3390_v4, %v4045_v56  ;;  %v1827_v31 = vrot.slane %v4175_v46, 2  ;;  %v3334_v4 = vld [vmem:[%s4674_s3 + $0x238] sm:$0xff] }
 0x100   :  { %3578 = vmatpush3.msra.mxu1 %v3243_v24  ;;  %3669 = vmatpush3.msra.mxu0 %v3282_v26  ;;  %v3285_v24 = vld [vmem:[%s4674_s3 + $0x130] sm:$0xff]  ;;  %v1673_v26 = vrot.slane %v4098_v20, 6 }
 0x101   :  { %3582 = vmatprep.subr.mxu1 %v3817_v50  ;;  %3580 = vmatmul.mubr.msk.f32.vlgmr.msra.gmra.mxu1 %vm216_vm1, %v595_v27  ;;  %v4271_v14 = vmax.f32 %v187_v9, 0.0  ;;  %v3292_v27 = vld [vmem:[%s4674_s3 + $0x158] sm:$0xff]  ;;  %v3291_v20 = vld [vmem:[%s4674_s3 + $0x150] sm:$0xff]  ;;  %v3017_v9 = vld [vmem:[%s4676_s5 + $0xe8] sm:$0xff] }
 0x102   :  { %3583 = vmatpush3.msra.mxu1 %v3247_v28  ;;  %3586 = vmatprep.mubr.msk.f32.mxu1 %vm3818_vm0, %v3817_v50  ;;  %v3392_v28 = vpop.f32.mrf.mxu0 }
 0x103   :  { %3584 = vmatprep.subr.mxu1 %v3817_v50  ;;  %3670 = vmatprep.mubr.msk.f32.mxu0 %vm3818_vm0, %v3817_v50 }
 0x104   :  { %3585 = vmatpush3.msra.mxu1 %v3246_v30  ;;  %3671 = vmatmul.mubr.msk.f32.vlgmr.msra.gmra.mxu0 %vm216_vm1, %v1596_v29  ;;  %v2212_v29 = vrot.slane %v4271_v14, 4  ;;  %v3393_v30 = vadd.f32 %v3392_v28, %v3391_v23  ;;  %v3003_v23 = vld [vmem:[%s4676_s5 + $0x78] sm:$0xff]  ;;  %v2998_v28 = vld [vmem:[%s4676_s5 + $0x50] sm:$0xff] }
 0x105   :  { %3589 = vmatprep.subr.mxu1 %v3817_v50  ;;  %3587 = vmatmul.mubr.msk.f32.vlgmr.msra.gmra.mxu1 %vm216_vm1, %v672_v32  ;;  %v3298_v32 = vld [vmem:[%s4674_s3 + $0x178] sm:$0xff] }
 0x106   :  { %3590 = vmatpush3.msra.mxu1 %v3250_v34  ;;  %3593 = vmatprep.mubr.msk.f32.mxu1 %vm3818_vm0, %v3817_v50  ;;  %v3313_v34 = vld [vmem:[%s4674_s3 + $0x1c8] sm:$0xff]  ;;  %v192_v35 = vadd.f32 %v3393_v30, %v4045_v56  ;;  %v2995_v30 = vld [vmem:[%s4676_s5 + $0x38] sm:$0xff] }
 0x107   :  { %3591 = vmatprep.subr.mxu1 %v3817_v50  ;;  %3680 = vmatprep.subr.mxu0 %v3817_v50 }
 0x108   :  { %3592 = vmatpush3.msra.mxu1 %v3249_v36  ;;  %3681 = vmatpush3.msra.mxu0 %v3289_v37  ;;  %v1981_v36 = vrot.slane %v4175_v46, 6  ;;  %v3304_v37 = vld [vmem:[%s4674_s3 + $0x198] sm:$0xff]  ;;  %v4361_v41 = vmax.f32 %v192_v35, 0.0  ;;  %v2990_v35 = vld [vmem:[%s4676_s5 + $0x10] sm:$0xff] }
 0x109   :  { %3596 = vmatprep.subr.mxu1 %v3817_v50  ;;  %3594 = vmatmul.mubr.msk.f32.vlgmr.msra.gmra.mxu1 %vm216_vm1, %v749_v38  ;;  %v3394_v38 = vpop.f32.mrf.mxu0 }
 0x10a   :  { %3597 = vmatpush3.msra.mxu1 %v3253_v40  ;;  %3600 = vmatprep.mubr.msk.f32.mxu1 %vm3818_vm0, %v3817_v50  ;;  %v3312_v40 = vld [vmem:[%s4674_s3 + $0x1c0] sm:$0xff]  ;;  %v2443_v58 = vrot.slane %v4361_v41, 2 }
 0x10b   :  { %3598 = vmatprep.subr.mxu1 %v3817_v50  ;;  %3682 = vmatprep.subr.mxu0 %v3817_v50 }
 0x10c   :  { %3599 = vmatpush3.msra.mxu1 %v3252_v42  ;;  %3683 = vmatpush3.msra.mxu0 %v3288_v43  ;;  %v3395_v42 = vpop.f32.mrf.mxu0  ;;  %v2135_v43 = vrot.slane %v4271_v14, 2 }
 0x10d   :  { %3603 = vmatprep.subr.mxu1 %v3817_v50  ;;  %3601 = vmatmul.mubr.msk.f32.vlgmr.msra.gmra.mxu1 %vm216_vm1, %v202_v44  ;;  %v3310_v44 = vld [vmem:[%s4674_s3 + $0x1b8] sm:$0xff] }
 0x10e   :  { %3604 = vmatpush3.msra.mxu1 %v3256_v45  ;;  %3607 = vmatprep.mubr.msk.f32.mxu1 %vm3818_vm0, %v3817_v50  ;;  %v3319_v45 = vld [vmem:[%s4674_s3 + $0x1e8] sm:$0xff] }
 0x10f   :  { %3605 = vmatprep.subr.mxu1 %v3817_v50  ;;  %3684 = vmatprep.mubr.msk.f32.mxu0 %vm3818_vm0, %v3817_v50 }
 0x110   :  { %3606 = vmatpush3.msra.mxu1 %v3255_v47  ;;  %3685 = vmatmul.mubr.msk.f32.vlgmr.msra.gmra.mxu0 %vm216_vm1, %v4175_v46  ;;  %v3396_v46 = vadd.f32 %v3395_v42, %v3394_v38  ;;  %v3309_v47 = vld [vmem:[%s4674_s3 + $0x1b0] sm:$0xff]  ;;  %v3136_v38 = vld [vmem:[%s4678_s7 + $0xf8] sm:$0xff]  ;;  %v3134_v42 = vld [vmem:[%s4678_s7 + $0xe8] sm:$0xff] }
 0x111   :  { %3610 = vmatprep.subr.mxu1 %v3817_v50  ;;  %3608 = vmatmul.mubr.msk.f32.vlgmr.msra.gmra.mxu1 %vm216_vm1, %v903_v48  ;;  %v2520_v48 = vrot.slane %v4361_v41, 4 }
 0x112   :  { %3611 = vmatpush3.msra.mxu1 %v3259_v49  ;;  %3614 = vmatprep.mubr.msk.f32.mxu1 %vm3818_vm0, %v3817_v50  ;;  %v3318_v49 = vld [vmem:[%s4674_s3 + $0x1e0] sm:$0xff] }
 0x113   :  { %3612 = vmatprep.subr.mxu1 %v3817_v50  ;;  %3694 = vmatprep.subr.mxu0 %v3817_v50 }
 0x114   :  { %3613 = vmatpush3.msra.mxu1 %v3258_v51  ;;  %3695 = vmatpush3.msra.mxu0 %v3295_v52  ;;  %v2289_v51 = vrot.slane %v4271_v14, 6  ;;  %v197_v52 = vadd.f32 %v3396_v46, %v4045_v56  ;;  %v3315_v56 = vld [vmem:[%s4674_s3 + $0x1d0] sm:$0xff]  ;;  %v3132_v46 = vld [vmem:[%s4678_s7 + $0xd8] sm:$0xff] }
 0x115   :  { %3617 = vmatprep.subr.mxu1 %v3817_v50  ;;  %3615 = vmatmul.mubr.msk.f32.vlgmr.msra.gmra.mxu1 %vm216_vm1, %v980_v53  ;;  %v3316_v53 = vld [vmem:[%s4674_s3 + $0x1d8] sm:$0xff] }
 0x116   :  { %3618 = vmatpush3.msra.mxu1 %v3262_v55  ;;  %3621 = vmatprep.mubr.msk.f32.mxu1 %vm3818_vm0, %v3817_v50  ;;  %v208_v55 = vmax.f32 %v197_v52, 0.0  ;;  %v3114_v52 = vld [vmem:[%s4678_s7 + $0x48] sm:$0xff] }
 0x117   :  { %3619 = vmatprep.subr.mxu1 %v3817_v50  ;;  %3696 = vmatprep.subr.mxu0 %v3817_v50 }
 0x118   :  { %3620 = vmatpush3.msra.mxu1 %v3261_v57  ;;  %3697 = vmatpush3.msra.mxu0 %v3294_v59  ;;  %v3324_v57 = vld [vmem:[%s4674_s3 + $0x200] sm:$0xff]  ;;  %v3322_v59 = vld [vmem:[%s4674_s3 + $0x1f8] sm:$0xff] }
 0x119   :  { %3624 = vmatprep.subr.mxu1 %v3817_v50  ;;  %3622 = vmatmul.mubr.msk.f32.vlgmr.msra.gmra.mxu1 %vm216_vm1, %v1057_v60  ;;  %v3331_v60 = vld [vmem:[%s4674_s3 + $0x228] sm:$0xff] }
 0x11a   :  { %3625 = vmatpush3.msra.mxu1 %v3265_v62  ;;  %3628 = vmatprep.mubr.msk.f32.mxu1 %vm3818_vm0, %v3817_v50  ;;  %v2828_v62 = vrot.slane %v208_v55, 4 }
 0x11b   :  { %3626 = vmatprep.subr.mxu1 %v3817_v50  ;;  %3698 = vmatprep.mubr.msk.f32.mxu0 %vm3818_vm0, %v3817_v50 }
 0x11c   :  { %3627 = vmatpush3.msra.mxu1 %v3264_v0  ;;  %3699 = vmatmul.mubr.msk.f32.vlgmr.msra.gmra.mxu0 %vm216_vm1, %v1904_v63  ;;  %v3330_v63 = vld [vmem:[%s4674_s3 + $0x220] sm:$0xff]  ;;  %v2597_v0 = vrot.slane %v4361_v41, 6 }
 0x11d   :  { %3631 = vmatprep.subr.mxu1 %v3817_v50  ;;  %3629 = vmatmul.mubr.msk.f32.vlgmr.msra.gmra.mxu1 %vm216_vm1, %v203_v2  ;;  %v3327_v2 = vld [vmem:[%s4674_s3 + $0x210] sm:$0xff] }
 0x11e   :  { %3632 = vmatpush3.msra.mxu1 %v3268_v3  ;;  %3635 = vmatprep.mubr.msk.f32.mxu1 %vm3818_vm0, %v3817_v50  ;;  %v2751_v3 = vrot.slane %v208_v55, 2 }
 0x11f   :  { %3633 = vmatprep.subr.mxu1 %v3817_v50  ;;  %3708 = vmatprep.subr.mxu0 %v3817_v50 }
 0x120   :  { %3634 = vmatpush3.msra.mxu1 %v3267_v5  ;;  %3709 = vmatpush3.msra.mxu0 %v3301_v6  ;;  %v3333_v5 = vld [vmem:[%s4674_s3 + $0x230] sm:$0xff]  ;;  %v2905_v6 = vrot.slane %v208_v55, 6  ;;  %s3819_s3 = smov [#allocation2]  }
 0x121   :  { %3638 = vmatprep.subr.mxu1 %v3817_v50  ;;  %3636 = vmatmul.mubr.msk.f32.vlgmr.msra.gmra.mxu1 %vm216_vm1, %v1211_v7  ;;  %v3019_v7 = vld [vmem:[%s4676_s5 + $0xf8] sm:$0xff]  ;;  %s3221_s28 = sshll.u32 %s3819_s3, 4  ;;  %s3222_s28 = int_to_ptr.vmem [resolvable:$true] %s3221_s28 }
 0x122   :  { %3639 = vmatpush3.msra.mxu1 %v3271_v8  ;;  %3642 = vmatprep.mubr.msk.f32.mxu1 %vm3818_vm0, %v3817_v50  ;;  %v3018_v8 = vld [vmem:[%s4676_s5 + $0xf0] sm:$0xff]  ;;  %p3800_p1 = scmp.lt.s32.totalorder %s3222_s28, %s3222_s28 }
 0x123   :  { %3640 = vmatprep.subr.mxu1 %v3817_v50  ;;  %3710 = vmatprep.subr.mxu0 %v3817_v50 }
 0x124   :  { %3641 = vmatpush3.msra.mxu1 %v3270_v10  ;;  %3711 = vmatpush3.msra.mxu0 %v3300_v11  ;;  %v3015_v10 = vld [vmem:[%s4676_s5 + $0xd8] sm:$0xff]  ;;  %v3014_v11 = vld [vmem:[%s4676_s5 + $0xd0] sm:$0xff] }
 0x125   :  { %3645 = vmatprep.subr.mxu1 %v3817_v50  ;;  %3643 = vmatmul.mubr.msk.f32.vlgmr.msra.gmra.mxu1 %vm216_vm1, %v1288_v12  ;;  %v3013_v12 = vld [vmem:[%s4676_s5 + $0xc8] sm:$0xff] }
 0x126   :  { %3646 = vmatpush3.msra.mxu1 %v3274_v13  ;;  %3649 = vmatprep.mubr.msk.f32.mxu1 %vm3818_vm0, %v3817_v50  ;;  %v3012_v13 = vld [vmem:[%s4676_s5 + $0xc0] sm:$0xff] }
 0x127   :  { %3647 = vmatprep.subr.mxu1 %v3817_v50  ;;  %3712 = vmatprep.mubr.msk.f32.mxu0 %vm3818_vm0, %v3817_v50 }
 0x128   :  { %3648 = vmatpush3.msra.mxu1 %v3273_v15  ;;  %3713 = vmatmul.mubr.msk.f32.vlgmr.msra.gmra.mxu0 %vm216_vm1, %v4271_v14  ;;  %v3011_v14 = vld [vmem:[%s4676_s5 + $0xb8] sm:$0xff]  ;;  %v3010_v15 = vld [vmem:[%s4676_s5 + $0xb0] sm:$0xff] }
 0x129   :  { %3659 = vmatprep.subr.mxu1 %v3817_v50  ;;  %3650 = vmatmul.mubr.msk.f32.vlgmr.msra.gmra.mxu1 %vm216_vm1, %v1365_v16  ;;  %v3009_v16 = vld [vmem:[%s4676_s5 + $0xa8] sm:$0xff] }
 0x12a   :  { %3660 = vmatpush3.msra.mxu1 %v3280_v17  ;;  %3663 = vmatprep.mubr.msk.f32.mxu1 %vm3818_vm0, %v3817_v50  ;;  %v3008_v17 = vld [vmem:[%s4676_s5 + $0xa0] sm:$0xff] }
 0x12b   :  { %3661 = vmatprep.subr.mxu1 %v3817_v50  ;;  %3722 = vmatprep.subr.mxu0 %v3817_v50 }
 0x12c   :  { %3662 = vmatpush3.msra.mxu1 %v3279_v18  ;;  %3723 = vmatpush3.msra.mxu0 %v3307_v19  ;;  %v3007_v18 = vld [vmem:[%s4676_s5 + $0x98] sm:$0xff]  ;;  %v3006_v19 = vld [vmem:[%s4676_s5 + $0x90] sm:$0xff] }
 0x12d   :  { %3673 = vmatprep.subr.mxu1 %v3817_v50  ;;  %3664 = vmatmul.mubr.msk.f32.vlgmr.msra.gmra.mxu1 %vm216_vm1, %v1519_v21  ;;  %v3005_v21 = vld [vmem:[%s4676_s5 + $0x88] sm:$0xff] }
 0x12e   :  { %3674 = vmatpush3.msra.mxu1 %v3286_v22  ;;  %3677 = vmatprep.mubr.msk.f32.mxu1 %vm3818_vm0, %v3817_v50  ;;  %v3004_v22 = vld [vmem:[%s4676_s5 + $0x80] sm:$0xff] }
 0x12f   :  { %3675 = vmatprep.subr.mxu1 %v3817_v50  ;;  %3724 = vmatprep.subr.mxu0 %v3817_v50 }
 0x130   :  { %3676 = vmatpush3.msra.mxu1 %v3285_v24  ;;  %3725 = vmatpush3.msra.mxu0 %v3306_v25  ;;  %v3002_v24 = vld [vmem:[%s4676_s5 + $0x70] sm:$0xff]  ;;  %v3001_v25 = vld [vmem:[%s4676_s5 + $0x68] sm:$0xff] }
 0x131   :  { %3687 = vmatprep.subr.mxu1 %v3817_v50  ;;  %3678 = vmatmul.mubr.msk.f32.vlgmr.msra.gmra.mxu1 %vm216_vm1, %v1673_v26  ;;  %v3000_v26 = vld [vmem:[%s4676_s5 + $0x60] sm:$0xff] }
 0x132   :  { %3688 = vmatpush3.msra.mxu1 %v3292_v27  ;;  %3691 = vmatprep.mubr.msk.f32.mxu1 %vm3818_vm0, %v3817_v50  ;;  %v2999_v27 = vld [vmem:[%s4676_s5 + $0x58] sm:$0xff] }
 0x133   :  { %3689 = vmatprep.subr.mxu1 %v3817_v50  ;;  %3726 = vmatprep.mubr.msk.f32.mxu0 %vm3818_vm0, %v3817_v50 }
 0x134   :  { %3690 = vmatpush3.msra.mxu1 %v3291_v20  ;;  %3727 = vmatmul.mubr.msk.f32.vlgmr.msra.gmra.mxu0 %vm216_vm1, %v2212_v29  ;;  %v2997_v29 = vld [vmem:[%s4676_s5 + $0x48] sm:$0xff]  ;;  %v2996_v20 = vld [vmem:[%s4676_s5 + $0x40] sm:$0xff] }
 0x135   :  { %3701 = vmatprep.subr.mxu1 %v3817_v50  ;;  %3692 = vmatmul.mubr.msk.f32.vlgmr.msra.gmra.mxu1 %vm216_vm1, %v1827_v31  ;;  %v2994_v31 = vld [vmem:[%s4676_s5 + $0x30] sm:$0xff] }
 0x136   :  { %3702 = vmatpush3.msra.mxu1 %v3298_v32  ;;  %3705 = vmatprep.mubr.msk.f32.mxu1 %vm3818_vm0, %v3817_v50  ;;  %v2993_v32 = vld [vmem:[%s4676_s5 + $0x28] sm:$0xff] }
 0x137   :  { %3703 = vmatprep.subr.mxu1 %v3817_v50  ;;  %3736 = vmatprep.subr.mxu0 %v3817_v50 }
 0x138   :  { %3704 = vmatpush3.msra.mxu1 %v3297_v33  ;;  %3737 = vmatpush3.msra.mxu0 %v3313_v34  ;;  %v2992_v33 = vld [vmem:[%s4676_s5 + $0x20] sm:$0xff]  ;;  %v2991_v34 = vld [vmem:[%s4676_s5 + $0x18] sm:$0xff] }
 0x139   :  { %3715 = vmatprep.subr.mxu1 %v3817_v50  ;;  %3706 = vmatmul.mubr.msk.f32.vlgmr.msra.gmra.mxu1 %vm216_vm1, %v1981_v36  ;;  %v2989_v36 = vld [vmem:[%s4676_s5 + $0x8] sm:$0xff] }
 0x13a   :  { %3716 = vmatpush3.msra.mxu1 %v3304_v37  ;;  %3738 = vmatprep.subr.mxu0 %v3817_v50  ;;  %v2988_v37 = vld [vmem:[%s4676_s5] sm:$0xff] }
 0x13b   :  { %3717 = vmatprep.subr.mxu1 %v3817_v50  ;;  %3719 = vmatprep.mubr.msk.f32.mxu1 %vm3818_vm0, %v3817_v50 }
 0x13c   :  { %3718 = vmatpush3.msra.mxu1 %v3303_v39  ;;  %3739 = vmatpush3.msra.mxu0 %v3312_v40  ;;  %v3120_v39 = vld [vmem:[%s4678_s7 + $0x78] sm:$0xff]  ;;  %v3135_v40 = vld [vmem:[%s4678_s7 + $0xf0] sm:$0xff] }
 0x13d   :  { %3729 = vmatprep.subr.mxu1 %v3817_v50  ;;  %3740 = vmatprep.mubr.msk.f32.mxu0 %vm3818_vm0, %v3817_v50 }
 0x13e   :  { %3720 = vmatmul.mubr.msk.f32.vlgmr.msra.gmra.mxu1 %vm216_vm1, %v2135_v43  ;;  %3741 = vmatmul.mubr.msk.f32.vlgmr.msra.gmra.mxu0 %vm216_vm1, %v4361_v41  ;;  %v3119_v41 = vld [vmem:[%s4678_s7 + $0x70] sm:$0xff]  ;;  %v3118_v43 = vld [vmem:[%s4678_s7 + $0x68] sm:$0xff] }
 0x13f   :  { %3730 = vmatpush3.msra.mxu1 %v3310_v44  ;;  %3750 = vmatprep.subr.mxu0 %v3817_v50  ;;  %v3133_v44 = vld [vmem:[%s4678_s7 + $0xe0] sm:$0xff] }
 0x140   :  { %3731 = vmatprep.subr.mxu1 %v3817_v50  ;;  %3751 = vmatpush3.msra.mxu0 %v3319_v45  ;;  %v3117_v45 = vld [vmem:[%s4678_s7 + $0x60] sm:$0xff] }
 0x141   :  { %3732 = vmatpush3.msra.mxu1 %v3309_v47  ;;  %3752 = vmatprep.subr.mxu0 %v3817_v50  ;;  %v3116_v47 = vld [vmem:[%s4678_s7 + $0x58] sm:$0xff] }
 0x142   :  { %3733 = vmatprep.mubr.msk.f32.mxu1 %vm3818_vm0, %v3817_v50  ;;  %3743 = vmatprep.subr.mxu1 %v3817_v50 }
 0x143   :  { %3753 = vmatpush3.msra.mxu0 %v3318_v49  ;;  %3754 = vmatprep.mubr.msk.f32.mxu0 %vm3818_vm0, %v3817_v50  ;;  %v3115_v49 = vld [vmem:[%s4678_s7 + $0x50] sm:$0xff] }
 0x144   :  { %3734 = vmatmul.mubr.msk.f32.vlgmr.msra.gmra.mxu1 %vm216_vm1, %v2289_v51  ;;  %3755 = vmatmul.mubr.msk.f32.vlgmr.msra.gmra.mxu0 %vm216_vm1, %v2520_v48  ;;  %v3131_v48 = vld [vmem:[%s4678_s7 + $0xd0] sm:$0xff]  ;;  %v3130_v51 = vld [vmem:[%s4678_s7 + $0xc8] sm:$0xff] }
 0x145   :  { %3744 = vmatpush3.msra.mxu1 %v3316_v53  ;;  %3764 = vmatprep.subr.mxu0 %v3817_v50  ;;  %v3129_v53 = vld [vmem:[%s4678_s7 + $0xc0] sm:$0xff] }
 0x146   :  { %3745 = vmatprep.subr.mxu1 %v3817_v50  ;;  %3765 = vmatpush3.msra.mxu0 %v3325_v54  ;;  %v3113_v54 = vld [vmem:[%s4678_s7 + $0x40] sm:$0xff] }
 0x147   :  { %3746 = vmatpush3.msra.mxu1 %v3315_v56  ;;  %3766 = vmatprep.subr.mxu0 %v3817_v50 }
 0x148   :  { %3747 = vmatprep.mubr.msk.f32.mxu1 %vm3818_vm0, %v3817_v50  ;;  %3757 = vmatprep.subr.mxu1 %v3817_v50 }
 0x149   :  { %3767 = vmatpush3.msra.mxu0 %v3324_v57  ;;  %3768 = vmatprep.mubr.msk.f32.mxu0 %vm3818_vm0, %v3817_v50  ;;  %v3112_v57 = vld [vmem:[%s4678_s7 + $0x38] sm:$0xff] }
 0x14a   :  { %3748 = vmatmul.mubr.msk.f32.vlgmr.msra.gmra.mxu1 %vm216_vm1, %v2443_v58  ;;  %3769 = vmatmul.mubr.msk.f32.vlgmr.msra.gmra.mxu0 %vm216_vm1, %v208_v55  ;;  %v3128_v55 = vld [vmem:[%s4678_s7 + $0xb8] sm:$0xff] }
 0x14b   :  { %3758 = vmatpush3.msra.mxu1 %v3322_v59  ;;  %3778 = vmatprep.subr.mxu0 %v3817_v50  ;;  %v3127_v59 = vld [vmem:[%s4678_s7 + $0xb0] sm:$0xff] }
 0x14c   :  { %3759 = vmatprep.subr.mxu1 %v3817_v50  ;;  %3779 = vmatpush3.msra.mxu0 %v3331_v60  ;;  %v3111_v60 = vld [vmem:[%s4678_s7 + $0x30] sm:$0xff] }
 0x14d   :  { %3760 = vmatpush3.msra.mxu1 %v3321_v61  ;;  %3780 = vmatprep.subr.mxu0 %v3817_v50 }
 0x14e   :  { %3761 = vmatprep.mubr.msk.f32.mxu1 %vm3818_vm0, %v3817_v50  ;;  %3771 = vmatprep.subr.mxu1 %v3817_v50 }
 0x14f   :  { %3781 = vmatpush3.msra.mxu0 %v3330_v63  ;;  %3782 = vmatprep.mubr.msk.f32.mxu0 %vm3818_vm0, %v3817_v50  ;;  %v3110_v63 = vld [vmem:[%s4678_s7 + $0x28] sm:$0xff] }
 0x150   :  { %3762 = vmatmul.mubr.msk.f32.vlgmr.msra.gmra.mxu1 %vm216_vm1, %v2597_v0  ;;  %3783 = vmatmul.mubr.msk.f32.vlgmr.msra.gmra.mxu0 %vm216_vm1, %v2828_v62  ;;  %v3126_v62 = vld [vmem:[%s4678_s7 + $0xa8] sm:$0xff] }
 0x151   :  { %3772 = vmatpush3.msra.mxu1 %v3328_v1  ;;  %3775 = vmatprep.mubr.msk.f32.mxu1 %vm3818_vm0, %v3817_v50  ;;  %v3125_v1 = vld [vmem:[%s4678_s7 + $0xa0] sm:$0xff] }
 0x152   :  { %3773 = vmatprep.subr.mxu1 %v3817_v50  ;;  %3096 = vmatprep.mubr.f32.mxu0 %v3817_v50 }
 0x153   :  { %3774 = vmatpush3.msra.mxu1 %v3327_v2  ;;  %3032 = vmatprep.subr.mxu0 %v3019_v7  ;;  %v3109_v2 = vld [vmem:[%s4678_s7 + $0x20] sm:$0xff] }
 0x154   :  { %3785 = vmatprep.subr.mxu1 %v3817_v50  ;;  %3776 = vmatmul.mubr.msk.f32.vlgmr.msra.gmra.mxu1 %vm216_vm1, %v2751_v3 }
 0x155   :  { %3786 = vmatpush3.msra.mxu1 %v3334_v4  ;;  %3789 = vmatprep.mubr.msk.f32.mxu1 %vm3818_vm0, %v3817_v50 }
 0x156   :  { %3787 = vmatprep.subr.mxu1 %v3817_v50  ;;  %3033 = vmatpush1.msra.mxu0 %v3018_v8  ;;  %v3016_v50 = vld [vmem:[%s4676_s5 + $0xe0] sm:$0xff] }
 0x157   :  { %3788 = vmatpush3.msra.mxu1 %v3333_v5  ;;  %3034 = vmatprep.subr.mxu0 %v3017_v9 }
 0x158   :  { %3790 = vmatmul.mubr.msk.f32.vlgmr.msra.gmra.mxu1 %vm216_vm1, %v2905_v6  ;;  %3035 = vmatpush1.msra.mxu0 %v3016_v50 }
 0x159   :  { %3036 = vmatprep.subr.mxu0 %v3015_v10  ;;  %3505 = vmatprep.subr.mxu1 %v3136_v38 }
 0x15a   :  { %3037 = vmatpush1.msra.mxu0 %v3014_v11  ;;  %3506 = vmatpush3.msra.mxu1 %v3120_v39 }
 0x15b   :  { %3038 = vmatprep.subr.mxu0 %v3013_v12  ;;  %3507 = vmatprep.subr.mxu1 %v3135_v40 }
 0x15c   :  { %3039 = vmatpush1.msra.mxu0 %v3012_v13  ;;  %3508 = vmatpush3.msra.mxu1 %v3119_v41 }
 0x15d   :  { %3040 = vmatprep.subr.mxu0 %v3011_v14  ;;  %3509 = vmatprep.subr.mxu1 %v3134_v42 }
 0x15e   :  { %3041 = vmatpush1.msra.mxu0 %v3010_v15  ;;  %3510 = vmatpush3.msra.mxu1 %v3118_v43 }
 0x15f   :  { %3042 = vmatprep.subr.mxu0 %v3009_v16  ;;  %3511 = vmatprep.subr.mxu1 %v3133_v44 }
 0x160   :  { %3043 = vmatpush1.msra.mxu0 %v3008_v17  ;;  %3512 = vmatpush3.msra.mxu1 %v3117_v45 }
 0x161   :  { %3044 = vmatprep.subr.mxu0 %v3007_v18  ;;  %3513 = vmatprep.subr.mxu1 %v3132_v46 }
 0x162   :  { %3045 = vmatpush1.msra.mxu0 %v3006_v19  ;;  %3514 = vmatpush3.msra.mxu1 %v3116_v47 }
 0x163   :  { %3046 = vmatprep.subr.mxu0 %v3005_v21  ;;  %3515 = vmatprep.subr.mxu1 %v3131_v48 }
 0x164   :  { %3047 = vmatpush1.msra.mxu0 %v3004_v22  ;;  %3516 = vmatpush3.msra.mxu1 %v3115_v49 }
 0x165   :  { %3048 = vmatprep.subr.mxu0 %v3003_v23  ;;  %3517 = vmatprep.subr.mxu1 %v3130_v51 }
 0x166   :  { %3049 = vmatpush1.msra.mxu0 %v3002_v24  ;;  %3518 = vmatpush3.msra.mxu1 %v3114_v52 }
 0x167   :  { %3050 = vmatprep.subr.mxu0 %v3001_v25  ;;  %3519 = vmatprep.subr.mxu1 %v3129_v53 }
 0x168   :  { %3051 = vmatpush1.msra.mxu0 %v3000_v26  ;;  %3520 = vmatpush3.msra.mxu1 %v3113_v54 }
 0x169   :  { %3052 = vmatprep.subr.mxu0 %v2999_v27  ;;  %3521 = vmatprep.subr.mxu1 %v3128_v55 }
 0x16a   :  { %3053 = vmatpush1.msra.mxu0 %v2998_v28  ;;  %3522 = vmatpush3.msra.mxu1 %v3112_v57 }
 0x16b   :  { %3054 = vmatprep.subr.mxu0 %v2997_v29  ;;  %3523 = vmatprep.subr.mxu1 %v3127_v59 }
 0x16c   :  { %3055 = vmatpush1.msra.mxu0 %v2996_v20  ;;  %3524 = vmatpush3.msra.mxu1 %v3111_v60 }
 0x16d   :  { %3056 = vmatprep.subr.mxu0 %v2995_v30  ;;  %3525 = vmatprep.subr.mxu1 %v3126_v62 }
 0x16e   :  { %3057 = vmatpush1.msra.mxu0 %v2994_v31  ;;  %3526 = vmatpush3.msra.mxu1 %v3110_v63 }
 0x16f   :  { %3058 = vmatprep.subr.mxu0 %v2993_v32  ;;  %3527 = vmatprep.subr.mxu1 %v3125_v1 }
 0x170   :  { %3059 = vmatpush1.msra.mxu0 %v2992_v33  ;;  %3528 = vmatpush3.msra.mxu1 %v3109_v2 }
 0x171   :  { %3060 = vmatprep.subr.mxu0 %v2991_v34 }
 0x172   :  { %3061 = vmatpush1.msra.mxu0 %v2990_v35 }
 0x173   :  { %3062 = vmatprep.subr.mxu0 %v2989_v36 }
 0x174   :  { %3063 = vmatpush1.msra.mxu0 %v2988_v37 }
 0x1ad   :  { %v285_v56 = vpop.f32.mrf.mxu1 }
 0x1af   :  { %v3546_v58 = vpop.f32.mrf.mxu1 }
 0x1b1   :  { %v357_v61 = vpop.f32.mrf.mxu1 }
 0x1b2   :  { %v358_v19 = vadd.f32 %v357_v61, %v285_v56 }
 0x1b3   :  { %v3553_v0 = vpop.f32.mrf.mxu1 }
 0x1b5   :  { %v433_v3 = vpop.f32.mrf.mxu1 }
 0x1b6   :  { %v437_v22 = vadd.f32 %v433_v3, %v358_v19 }
 0x1b7   :  { %v3560_v4 = vpop.f32.mrf.mxu1 }
 0x1b9   :  { %v510_v5 = vpop.f32.mrf.mxu1 }
 0x1ba   :  { %v514_v25 = vadd.f32 %v510_v5, %v437_v22 }
 0x1bb   :  { %v3567_v6 = vpop.f32.mrf.mxu1  ;;  %v1511_v7 = vpop.f32.mrf.mxu0 }
 0x1bd   :  { %v587_v8 = vpop.f32.mrf.mxu1  ;;  %v3658_v9 = vpop.f32.mrf.mxu0 }
 0x1be   :  { %v591_v28 = vadd.f32 %v587_v8, %v514_v25 }
 0x1bf   :  { %v3574_v50 = vpop.f32.mrf.mxu1 }
 0x1c1   :  { %v664_v10 = vpop.f32.mrf.mxu1 }
 0x1c2   :  { %v668_v20 = vadd.f32 %v664_v10, %v591_v28 }
 0x1c3   :  { %v3581_v11 = vpop.f32.mrf.mxu1 }
 0x1c4   :  { %v1665_v12 = vpop.f32.mrf.mxu0 }
 0x1c5   :  { %v741_v13 = vpop.f32.mrf.mxu1 }
 0x1c6   :  { %v3672_v14 = vpop.f32.mrf.mxu0  ;;  %v745_v31 = vadd.f32 %v741_v13, %v668_v20 }
 0x1c7   :  { %v3588_v15 = vpop.f32.mrf.mxu1 }
 0x1c9   :  { %v818_v16 = vpop.f32.mrf.mxu1 }
 0x1ca   :  { %v822_v33 = vadd.f32 %v818_v16, %v745_v31 }
 0x1cb   :  { %v3595_v17 = vpop.f32.mrf.mxu1 }
 0x1cd   :  { %v895_v18 = vpop.f32.mrf.mxu1 }
 0x1ce   :  { %v899_v35 = vadd.f32 %v895_v18, %v822_v33 }
 0x1cf   :  { %v3602_v21 = vpop.f32.mrf.mxu1 }
 0x1d0   :  { %v1819_v23 = vpop.f32.mrf.mxu0 }
 0x1d1   :  { %v972_v24 = vpop.f32.mrf.mxu1 }
 0x1d2   :  { %v3686_v26 = vpop.f32.mrf.mxu0  ;;  %v976_v38 = vadd.f32 %v972_v24, %v899_v35 }
 0x1d3   :  { %v3609_v27 = vpop.f32.mrf.mxu1 }
 0x1d5   :  { %v1049_v29 = vpop.f32.mrf.mxu1 }
 0x1d6   :  { %v1053_v41 = vadd.f32 %v1049_v29, %v976_v38 }
 0x1d7   :  { %v3616_v30 = vpop.f32.mrf.mxu1 }
 0x1d9   :  { %v1126_v32 = vpop.f32.mrf.mxu1 }
 0x1da   :  { %v1130_v43 = vadd.f32 %v1126_v32, %v1053_v41 }
 0x1db   :  { %v3623_v34 = vpop.f32.mrf.mxu1 }
 0x1dc   :  { %v1973_v36 = vpop.f32.mrf.mxu0 }
 0x1dd   :  { %v1203_v37 = vpop.f32.mrf.mxu1 }
 0x1de   :  { %v3700_v39 = vpop.f32.mrf.mxu0  ;;  %v1207_v45 = vadd.f32 %v1203_v37, %v1130_v43 }
 0x1df   :  { %v3630_v40 = vpop.f32.mrf.mxu1  ;;  %v3336_v39 = vld [vmem:[%s4675_s4] ss:$0 sm:$0xff] }
 0x1e1   :  { %v1280_v42 = vpop.f32.mrf.mxu1 }
 0x1e2   :  { %v1284_v47 = vadd.f32 %v1280_v42, %v1207_v45  ;;  %v3108_v45 = vld [vmem:[%s4678_s7 + $0x18] sm:$0xff] }
 0x1e3   :  { %v3637_v44 = vpop.f32.mrf.mxu1 }
 0x1e4   :  { %v3124_v44 = vld [vmem:[%s4678_s7 + $0x98] sm:$0xff] }
 0x1e5   :  { %v1357_v46 = vpop.f32.mrf.mxu1  ;;  %3529 = vmatprep.subr.mxu1 %v3124_v44 }
 0x1e6   :  { %v1361_v49 = vadd.f32 %v1357_v46, %v1284_v47  ;;  %3530 = vmatpush3.msra.mxu1 %v3108_v45  ;;  %v3123_v46 = vld [vmem:[%s4678_s7 + $0x90] sm:$0xff] }
 0x1e7   :  { %v3644_v48 = vpop.f32.mrf.mxu1  ;;  %3531 = vmatprep.subr.mxu1 %v3123_v46  ;;  %v3107_v47 = vld [vmem:[%s4678_s7 + $0x10] sm:$0xff] }
 0x1e8   :  { %v2127_v51 = vpop.f32.mrf.mxu0  ;;  %3532 = vmatpush3.msra.mxu1 %v3107_v47  ;;  %v3122_v48 = vld [vmem:[%s4678_s7 + $0x88] sm:$0xff] }
 0x1e9   :  { %v1434_v52 = vpop.f32.mrf.mxu1  ;;  %3533 = vmatprep.subr.mxu1 %v3122_v48 }
 0x1ea   :  { %v1438_v53 = vadd.f32 %v1434_v52, %v1361_v49  ;;  %v3714_v54 = vpop.f32.mrf.mxu0  ;;  %v3106_v49 = vld [vmem:[%s4678_s7 + $0x8] sm:$0xff]  ;;  %v3105_v52 = vld [vmem:[%s4678_s7] sm:$0xff] }
 0x1eb   :  { %v3651_v56 = vpop.f32.mrf.mxu1  ;;  %3534 = vmatpush3.msra.mxu1 %v3106_v49 }
 0x1ec   :  { %v1515_v55 = vadd.f32 %v1511_v7, %v1438_v53  ;;  %v3022_v53 = vlaneseq }
 0x1ed   :  { %v1588_v57 = vpop.f32.mrf.mxu1 }
 0x1ee   :  { %v1592_v58 = vadd.f32 %v1588_v57, %v1515_v55  ;;  %v3023_v54 = vshrl.u32 %v3022_v53, 7  ;;  %v3020_v55 = vld [vmem:[%s4677_s6] sm:$0x3]  ;;  %s3795_s6 = scalar_lea.vmem %s3222_s28, 32 }
 0x1ef   :  { %v3665_v59 = vpop.f32.mrf.mxu1  ;;  %p3796_p0 = scmp.ne.s32.totalorder %s3222_s28, %s3795_s6  ;;  %p3801_p2 = scmp.lt.s32.totalorder %s3795_s6, %s3795_s6 }
 0x1f0   :  { %v1669_v60 = vadd.f32 %v1665_v12, %v1592_v58  ;;  %v3024_v56 = vsub.s32 0, %v3023_v54  ;;  %v3028_v57 = vsub.s32 1, %v3023_v54 }
 0x1f1   :  { %v1742_v61 = vpop.f32.mrf.mxu1  ;;  %p3802_p3 = por %p3801_p2, %p3800_p1 }
 0x1f2   :  { %v1746_v62 = vadd.f32 %v1742_v61, %v1669_v60  ;;  %v3025_v58 = vrot.slane %v3020_v55, %v3024_v56  ;;  %v3029_v59 = vrot.slane %v3020_v55, %v3028_v57 }
 0x1f3   :  { %v3679_v63 = vpop.f32.mrf.mxu1  ;;  %p3803_p4 = pnand %p3802_p3, %p3796_p0 }
 0x1f4   :  { %v1823_v0 = vadd.f32 %v1819_v23, %v1746_v62  ;;  %v2281_v1 = vpop.f32.mrf.mxu0 }
 0x1f5   :  { %v1896_v2 = vpop.f32.mrf.mxu1 }
 0x1f6   :  { %v1900_v3 = vadd.f32 %v1896_v2, %v1823_v0  ;;  %v3728_v4 = vpop.f32.mrf.mxu0 }
 0x1f7   :  { %v3693_v5 = vpop.f32.mrf.mxu1  ;;  %v3337_v4 = vld [vmem:[%s4679_s8] ss:$0 sm:$0xff] }
 0x1f8   :  { %v1977_v6 = vadd.f32 %v1973_v36, %v1900_v3 }
 0x1f9   :  { %v2050_v8 = vpop.f32.mrf.mxu1 }
 0x1fa   :  { %v2054_v9 = vadd.f32 %v2050_v8, %v1977_v6 }
 0x1fb   :  { %v3707_v50 = vpop.f32.mrf.mxu1 }
 0x1fc   :  { %v2131_v10 = vadd.f32 %v2127_v51, %v2054_v9  ;;  %v3121_v51 = vld [vmem:[%s4678_s7 + $0x80] sm:$0xff] }
 0x1fd   :  { %3535 = vmatprep.subr.mxu1 %v3121_v51 }
 0x1fe   :  { %v2204_v11 = vpop.f32.mrf.mxu1  ;;  %v2435_v7 = vpop.f32.mrf.mxu0  ;;  %3536 = vmatpush3.msra.mxu1 %v3105_v52 }
 0x1ff   :  { %v2208_v13 = vadd.f32 %v2204_v11, %v2131_v10 }
 0x200   :  { %v3721_v14 = vpop.f32.mrf.mxu1  ;;  %v3742_v15 = vpop.f32.mrf.mxu0 }
 0x201   :  { %v2285_v12 = vadd.f32 %v2281_v1, %v2208_v13 }
 0x204   :  { %v2358_v16 = vpop.f32.mrf.mxu1  ;;  %v2589_v17 = vpop.f32.mrf.mxu0 }
 0x205   :  { %v2362_v18 = vadd.f32 %v2358_v16, %v2285_v12 }
 0x206   :  { %v3735_v19 = vpop.f32.mrf.mxu1  ;;  %v3756_v21 = vpop.f32.mrf.mxu0 }
 0x207   :  { %v2439_v22 = vadd.f32 %v2435_v7, %v2362_v18 }
 0x20a   :  { %v2512_v23 = vpop.f32.mrf.mxu1  ;;  %v2743_v24 = vpop.f32.mrf.mxu0 }
 0x20b   :  { %v2516_v25 = vadd.f32 %v2512_v23, %v2439_v22 }
 0x20c   :  { %v3749_v26 = vpop.f32.mrf.mxu1  ;;  %v3770_v27 = vpop.f32.mrf.mxu0 }
 0x20d   :  { %v2593_v28 = vadd.f32 %v2589_v17, %v2516_v25 }
 0x210   :  { %v2666_v29 = vpop.f32.mrf.mxu1  ;;  %v2897_v20 = vpop.f32.mrf.mxu0 }
 0x211   :  { %v2670_v30 = vadd.f32 %v2666_v29, %v2593_v28 }
 0x212   :  { %v3763_v31 = vpop.f32.mrf.mxu1  ;;  %v3784_v32 = vpop.f32.mrf.mxu0 }
 0x213   :  { %v2747_v33 = vadd.f32 %v2743_v24, %v2670_v30 }
 0x214   :  { %v2820_v34 = vpop.f32.mrf.mxu1 }
 0x215   :  { %v2824_v35 = vadd.f32 %v2820_v34, %v2747_v33 }
 0x216   :  { %v3777_v36 = vpop.f32.mrf.mxu1 }
 0x217   :  { %v2901_v37 = vadd.f32 %v2897_v20, %v2824_v35 }
 0x218   :  { %v2974_v38 = vpop.f32.mrf.mxu1 }
 0x219   :  { %v2978_v40 = vadd.f32 %v2974_v38, %v2901_v37 }
 0x21a   :  { %v3791_v41 = vpop.f32.mrf.mxu1 }
 0x21b   :  { %v2986_v42 = vadd.f32 %v3336_v39, %v2978_v40 }
 0x21d   :  { %v2987_v43 = vmax.f32 %v2986_v42, 0.0 }
 0x21f   :  { %3097 = vmatmul.mubr.f32.vlgmr.msra.gmra.mxu0 %v2987_v43 }
 0x2df   :  { %v3098_v60 = vpop.f32.mrf.mxu0 }
 0x2e0   :  { %v3099_v61 = vadd.f32 %v3098_v60, %v3025_v58 }
 0x2e1   :  { %v3100_v62 = vpop.f32.mrf.mxu0 }
 0x2e2   :  { %v3101_v63 = vadd.f32 %v3100_v62, %v3029_v59  ;;  %v3103_v1 = vmax.f32 %v3099_v61, 0.0 }
 0x2e4   :  { %v3104_v0 = vmax.f32 %v3101_v63, 0.0 }
 0x2e6   :  { %3208 = vmatprep.mubr.f32.mxu1 %v3104_v0 }
 0x2e7   :  { %3209 = vmatmul.mubr.f32.vlgmr.msra.gmra.mxu1 %v3103_v1 }
 0x3a7   :  { %v3537_v2 = vpop.f32.mrf.mxu1 }
 0x3a9   :  { %v3538_v3 = vpop.f32.mrf.mxu1 }
 0x3aa   :  { %v3539_v5 = vadd.f32 %v3538_v3, %v3537_v2 }
 0x3ac   :  { %v3211_v6 = vadd.f32 %v3539_v5, %v3337_v4 }
 0x3ae   :  { %3214 = vst [vmem:[#allocation2] sm:$0x3] %v3211_v6 }
 0x3af   :  { %3806 = shalt.err (!%p3803_p4)
}
 0x3b0   :  { %3224 = dma.vmem_to_hbm [thread:$0]  %s3222_s28, 32, %s4680_s9, [#allocation3]  }
 0x3b1   :  { %3815 = dma.done.wait [#allocation3], 32  }
 0x3b2   :  { %3816 = vsyncadd [#allocation3], 4294967264 }
 0x3b3   :  { %3228 = vsyncpa [#allocation3], 1 }

</bundles_post_ra>
